<compile_context>
chip_gen: v7x
topology: tpu7x:2x2x1
jax: 0.10.0
libtpu: 0.0.40
codegen_flags: <defaults>
</compile_context>

<pallas_src>
import functools

import jax
import jax.numpy as jnp
from jax import lax
from jax.experimental import pallas as pl
from jax.experimental.pallas import tpu as pltpu


def _l2_normalize(v):
    # F.normalize(p=2, dim=1, eps=1e-12): x / max(||x||, eps)
    #   == x * rsqrt(max(||x||^2, eps^2))      (both branches non-negative)
    eps2 = jnp.float32(1e-24)
    return v * lax.rsqrt(jnp.maximum(jnp.sum(v * v, axis=1, keepdims=True), eps2))


# ----------------------------------------------------------------------------
# Path A kernels: wb resident in VMEM, grid = (B tiles,), no reduction axis.
# ----------------------------------------------------------------------------

def _resident_train_kernel(x_ref, wb_ref, bb_ref, wbig_ref, bbig_ref,
                           wlin_ref, blin_ref, distil_ref, target_ref,
                           *, normalize):
    # bf16 cast happens on the VPU, hidden under the (f32) x DMA.
    xb = x_ref[...].astype(jnp.bfloat16)
    feat = jnp.dot(xb, wb_ref[...],
                   preferred_element_type=jnp.float32) + bb_ref[...]
    fb = feat.astype(jnp.bfloat16)
    distil = jnp.dot(fb, wbig_ref[...],
                     preferred_element_type=jnp.float32) + bbig_ref[...]
    target = jnp.dot(fb, wlin_ref[...],
                     preferred_element_type=jnp.float32) + blin_ref[...]
    if normalize:
        distil = _l2_normalize(distil)
        target = _l2_normalize(target)
    distil_ref[...] = distil.astype(distil_ref.dtype)
    target_ref[...] = target.astype(target_ref.dtype)


def _resident_infer_kernel(x_ref, wb_ref, bb_ref, wlin_ref, blin_ref,
                           target_ref, *, normalize):
    xb = x_ref[...].astype(jnp.bfloat16)
    feat = jnp.dot(xb, wb_ref[...],
                   preferred_element_type=jnp.float32) + bb_ref[...]
    target = jnp.dot(feat.astype(jnp.bfloat16), wlin_ref[...],
                     preferred_element_type=jnp.float32) + blin_ref[...]
    if normalize:
        target = _l2_normalize(target)
    target_ref[...] = target.astype(target_ref.dtype)


# ----------------------------------------------------------------------------
# Path B kernels: K-tiled reduction (only when wb is too large for residency).
# ----------------------------------------------------------------------------

def _ktiled_train_kernel(x_ref, wb_ref, bb_ref, wbig_ref, bbig_ref,
                         wlin_ref, blin_ref, distil_ref, target_ref, acc_ref,
                         *, normalize):
    k = pl.program_id(1)

    @pl.when(k == 0)
    def _():
        # Fold the base bias into the accumulator init (saves an epilogue add).
        acc_ref[...] = jnp.broadcast_to(bb_ref[...], acc_ref.shape)

    acc_ref[...] += jnp.dot(x_ref[...].astype(jnp.bfloat16), wb_ref[...],
                            preferred_element_type=jnp.float32)

    @pl.when(k == pl.num_programs(1) - 1)
    def _():
        fb = acc_ref[...].astype(jnp.bfloat16)
        distil = jnp.dot(fb, wbig_ref[...],
                         preferred_element_type=jnp.float32) + bbig_ref[...]
        target = jnp.dot(fb, wlin_ref[...],
                         preferred_element_type=jnp.float32) + blin_ref[...]
        if normalize:
            distil = _l2_normalize(distil)
            target = _l2_normalize(target)
        distil_ref[...] = distil.astype(distil_ref.dtype)
        target_ref[...] = target.astype(target_ref.dtype)


def _ktiled_infer_kernel(x_ref, wb_ref, bb_ref, wlin_ref, blin_ref,
                         target_ref, acc_ref, *, normalize):
    k = pl.program_id(1)

    @pl.when(k == 0)
    def _():
        acc_ref[...] = jnp.broadcast_to(bb_ref[...], acc_ref.shape)

    acc_ref[...] += jnp.dot(x_ref[...].astype(jnp.bfloat16), wb_ref[...],
                            preferred_element_type=jnp.float32)

    @pl.when(k == pl.num_programs(1) - 1)
    def _():
        target = jnp.dot(acc_ref[...].astype(jnp.bfloat16), wlin_ref[...],
                         preferred_element_type=jnp.float32) + blin_ref[...]
        if normalize:
            target = _l2_normalize(target)
        target_ref[...] = target.astype(target_ref.dtype)


# ----------------------------------------------------------------------------
# Wrapper
# ----------------------------------------------------------------------------

def _round_up(n, m):
    return (n + m - 1) // m * m


def _choose_tm(b):
    # Large M tiles fill the MXU (256x256 on v6e/v7x), but keep >= 2 parallel
    # grid tiles whenever the batch permits so both v7x TensorCores get work.
    for cand in (256, 128, 64, 32, 16):
        if b >= 2 * cand:
            return cand
    # Tiny batch: one tile covering the whole (padded-to-8) batch.
    return min(256, _round_up(b, 8))


def _vmem_limit(stream_bytes, invariant_bytes, out_bytes, scratch_bytes=0):
    # Streamed blocks double-buffered, constant-index blocks counted once,
    # 1.5x headroom; clamped to [32, 48] MiB (v7x has 64 MiB VMEM per TC).
    est = 2 * stream_bytes + invariant_bytes + 2 * out_bytes + scratch_bytes
    return int(min(max(3 * est // 2 + (4 << 20), 32 << 20), 48 << 20))


def distill_linear_embedding(x, wb, bb, wbig, bbig, wlin, blin,
                             *, normalize=True, training=True, k_block=None):
    """Fused DistillLinearEmbedding forward.

    x:    (B, C, H, W)            activations (any float dtype; cast to bf16 in-kernel)
    wb:   (C*H*W, output_size)    `base` (global conv == matmul) weight, (in, out)
    bb:   (1, output_size)
    wbig: (output_size, distil_embedding_size)   big_linear.weight.T  (unused if eval)
    bbig: (1, distil_embedding_size)
    wlin: (output_size, embedding_size)          linear.weight.T
    blin: (1, embedding_size)
    Returns (distil, target) if training else target (torch module semantics).
    """
    B = x.shape[0]
    x_flat = x.reshape(B, -1)           # torch .view semantics; kept in original
    K = x_flat.shape[1]                 # dtype -- the cast to bf16 happens in-kernel.
    out_size = wb.shape[1]
    embed_size = wlin.shape[1]
    distil_size = wbig.shape[1] if training else 0

    tm = _choose_tm(B)
    B_pad = _round_up(B, tm)
    if B_pad != B:
        x_flat = jnp.pad(x_flat, ((0, B_pad - B), (0, 0)))
    n_b = B_pad // tm

    wb_b = wb.astype(jnp.bfloat16)      # no-ops if weights are already bf16
    bb_f = bb.reshape(1, out_size).astype(jnp.float32)
    wlin_b = wlin.astype(jnp.bfloat16)
    blin_f = blin.reshape(1, embed_size).astype(jnp.float32)
    if training:
        wbig_b = wbig.astype(jnp.bfloat16)
        bbig_f = bbig.reshape(1, distil_size).astype(jnp.float32)

    x_isize = x_flat.dtype.itemsize
    wb_bytes = K * out_size * 2
    proj_bytes = out_size * embed_size * 2 + embed_size * 4
    if training:
        proj_bytes += out_size * distil_size * 2 + distil_size * 4
    out_bytes = tm * embed_size * 4 + tm * distil_size * 4

    # Path selection: keep wb resident (one HBM pass over the weights, no
    # reduction axis / accumulator) unless it is too large for VMEM.
    tk = k_block
    if tk is not None:
        assert K % tk == 0 and tk % 128 == 0, \
            "k_block must be a 128-multiple divisor of K"
    elif wb_bytes > (12 << 20):
        for cand in (2048, 1024, 512, 256):
            if K % cand == 0:
                tk = cand
                break
        # TODO(synk): pad K instead of falling back to residency when K has no
        #             256-multiple divisor and wb is too large for VMEM.

    if tk is None:
        # ---- Path A: resident wb, grid = (B tiles,) ------------------------
        stream = tm * K * x_isize
        invariant = wb_bytes + out_size * 4 + proj_bytes
        base_specs = [
            pl.BlockSpec((tm, K), lambda i: (i, 0)),            # x  (streamed)
            pl.BlockSpec((K, out_size), lambda i: (0, 0)),      # wb (resident)
            pl.BlockSpec((1, out_size), lambda i: (0, 0)),      # bb
        ]
        lin_specs = [
            pl.BlockSpec((out_size, embed_size), lambda i: (0, 0)),   # wlin
            pl.BlockSpec((1, embed_size), lambda i: (0, 0)),          # blin
        ]
        params = pltpu.CompilerParams(
            dimension_semantics=("parallel",),
            vmem_limit_bytes=_vmem_limit(stream, invariant, out_bytes))
        if training:
            big_specs = [
                pl.BlockSpec((out_size, distil_size), lambda i: (0, 0)),  # wbig
                pl.BlockSpec((1, distil_size), lambda i: (0, 0)),         # bbig
            ]
            distil, target = pl.pallas_call(
                functools.partial(_resident_train_kernel, normalize=normalize),
                out_shape=(jax.ShapeDtypeStruct((B_pad, distil_size), jnp.float32),
                           jax.ShapeDtypeStruct((B_pad, embed_size), jnp.float32)),
                grid_spec=pltpu.PrefetchScalarGridSpec(
                    num_scalar_prefetch=0, grid=(n_b,),
                    in_specs=base_specs + big_specs + lin_specs,
                    out_specs=[pl.BlockSpec((tm, distil_size), lambda i: (i, 0)),
                               pl.BlockSpec((tm, embed_size), lambda i: (i, 0))]),
                compiler_params=params,
            )(x_flat, wb_b, bb_f, wbig_b, bbig_f, wlin_b, blin_f)
            return distil[:B], target[:B]
        target = pl.pallas_call(
            functools.partial(_resident_infer_kernel, normalize=normalize),
            out_shape=jax.ShapeDtypeStruct((B_pad, embed_size), jnp.float32),
            grid_spec=pltpu.PrefetchScalarGridSpec(
                num_scalar_prefetch=0, grid=(n_b,),
                in_specs=base_specs + lin_specs,
                out_specs=pl.BlockSpec((tm, embed_size), lambda i: (i, 0))),
            compiler_params=params,
        )(x_flat, wb_b, bb_f, wlin_b, blin_f)
        return target[:B]

    # ---- Path B: K-tiled reduction, grid = (B tiles, K tiles) ---------------
    n_k = K // tk
    stream = tm * tk * x_isize + tk * out_size * 2
    invariant = out_size * 4 + proj_bytes
    scratch = tm * out_size * 4
    base_specs = [
        pl.BlockSpec((tm, tk), lambda i, k: (i, k)),            # x  (streamed)
        pl.BlockSpec((tk, out_size), lambda i, k: (k, 0)),      # wb (streamed)
        pl.BlockSpec((1, out_size), lambda i, k: (0, 0)),       # bb
    ]
    lin_specs = [
        pl.BlockSpec((out_size, embed_size), lambda i, k: (0, 0)),   # wlin
        pl.BlockSpec((1, embed_size), lambda i, k: (0, 0)),          # blin
    ]
    params = pltpu.CompilerParams(
        dimension_semantics=("parallel", "arbitrary"),
        vmem_limit_bytes=_vmem_limit(stream, invariant, out_bytes, scratch))
    scratch_shapes = [pltpu.VMEM((tm, out_size), jnp.float32)]
    if training:
        big_specs = [
            pl.BlockSpec((out_size, distil_size), lambda i, k: (0, 0)),  # wbig
            pl.BlockSpec((1, distil_size), lambda i, k: (0, 0)),         # bbig
        ]
        distil, target = pl.pallas_call(
            functools.partial(_ktiled_train_kernel, normalize=normalize),
            out_shape=(jax.ShapeDtypeStruct((B_pad, distil_size), jnp.float32),
                       jax.ShapeDtypeStruct((B_pad, embed_size), jnp.float32)),
            grid_spec=pltpu.PrefetchScalarGridSpec(
                num_scalar_prefetch=0, grid=(n_b, n_k),
                in_specs=base_specs + big_specs + lin_specs,
                out_specs=[pl.BlockSpec((tm, distil_size), lambda i, k: (i, 0)),
                           pl.BlockSpec((tm, embed_size), lambda i, k: (i, 0))],
                scratch_shapes=scratch_shapes),
            compiler_params=params,
        )(x_flat, wb_b, bb_f, wbig_b, bbig_f, wlin_b, blin_f)
        return distil[:B], target[:B]
    target = pl.pallas_call(
        functools.partial(_ktiled_infer_kernel, normalize=normalize),
        out_shape=jax.ShapeDtypeStruct((B_pad, embed_size), jnp.float32),
        grid_spec=pltpu.PrefetchScalarGridSpec(
            num_scalar_prefetch=0, grid=(n_b, n_k),
            in_specs=base_specs + lin_specs,
            out_specs=pl.BlockSpec((tm, embed_size), lambda i, k: (i, 0)),
            scratch_shapes=scratch_shapes),
        compiler_params=params,
    )(x_flat, wb_b, bb_f, wlin_b, blin_f)
    return target[:B]


# ----------------------------------------------------------------------------
# Pure-JAX reference (mirrors the kernel's numerics for a given weight dtype)
# ----------------------------------------------------------------------------

def _ref_forward(x, wb, bb, wbig, bbig, wlin, blin, weight_dtype=jnp.bfloat16):
    wd = weight_dtype
    x_flat = x.reshape(x.shape[0], -1).astype(wd)
    feat = jnp.dot(x_flat, wb.astype(wd),
                   preferred_element_type=jnp.float32) + bb.reshape(1, -1).astype(jnp.float32)
    fw = feat.astype(wd)
    distil = jnp.dot(fw, wbig.astype(wd),
                     preferred_element_type=jnp.float32) + bbig.reshape(1, -1).astype(jnp.float32)
    target = jnp.dot(fw, wlin.astype(wd),
                     preferred_element_type=jnp.float32) + blin.reshape(1, -1).astype(jnp.float32)
    eps = 1e-12
    distil = distil / jnp.maximum(jnp.linalg.norm(distil, axis=1, keepdims=True), eps)
    target = target / jnp.maximum(jnp.linalg.norm(target, axis=1, keepdims=True), eps)
    return distil, target


if __name__ == "__main__":
    key = jax.random.PRNGKey(0)

    # Small shapes consistent with the module defaults.
    B, C, H, W = 2, 4, 16, 16
    output_size = 512
    distil_embedding_size = 512
    embedding_size = 128
    K = C * H * W

    ks = jax.random.split(key, 7)
    x = jax.random.normal(ks[0], (B, C, H, W), dtype=jnp.float32)

    # Synthetic `base`: Conv2d(C, output_size, kernel=(H, W)) == one matmul on
    # the flattened input.
    # TODO(synk): the real `base` backbone is an arbitrary nn.Module; only the
    #             global-conv (single matmul) case is fused here.
    def uinit(k, shape, fan_in):
        bound = 1.0 / jnp.sqrt(fan_in)
        return jax.random.uniform(k, shape, jnp.float32, -bound, bound)

    wb   = uinit(ks[1], (K, output_size), K)
    bb   = uinit(ks[2], (1, output_size), K)
    wbig = uinit(ks[3], (output_size, distil_embedding_size), output_size)
    bbig = uinit(ks[4], (1, distil_embedding_size), output_size)
    wlin = uinit(ks[5], (output_size, embedding_size), output_size)
    blin = uinit(ks[6], (1, embedding_size), output_size)

    # Resident-wb path (the common case).
    distil, target = distill_linear_embedding(
        x, wb, bb, wbig, bbig, wlin, blin, normalize=True, training=True)
    # K-tiled reduction path (forced, to cover the large-wb fallback).
    distil_k, target_k = distill_linear_embedding(
        x, wb, bb, wbig, bbig, wlin, blin, normalize=True, training=True,
        k_block=512)
    # Inference path (never touches wbig).
    target_only = distill_linear_embedding(
        x, wb, bb, wbig, bbig, wlin, blin, normalize=True, training=False)
    jax.block_until_ready((distil, target, distil_k, target_k, target_only))

    assert distil.shape == (B, distil_embedding_size)
    assert target.shape == (B, embedding_size)
    assert distil_k.shape == (B, distil_embedding_size)
    assert target_k.shape == (B, embedding_size)
    assert target_only.shape == (B, embedding_size)

    # Tight check vs. a reference using the same bf16-weight / f32-acc numerics.
    d_ref, t_ref = _ref_forward(x, wb, bb, wbig, bbig, wlin, blin,
                                weight_dtype=jnp.bfloat16)
    for got, ref in ((distil, d_ref), (target, t_ref),
                     (distil_k, d_ref), (target_k, t_ref),
                     (target_only, t_ref)):
        assert jnp.allclose(got, ref, atol=2e-3, rtol=2e-2), \
            float(jnp.max(jnp.abs(got - ref)))

    # Loose sanity check vs. the original full-f32 module semantics.
    d_f32, t_f32 = _ref_forward(x, wb, bb, wbig, bbig, wlin, blin,
                                weight_dtype=jnp.float32)
    assert jnp.max(jnp.abs(distil - d_f32)) < 2e-2
    assert jnp.max(jnp.abs(target - t_f32)) < 2e-2

    print("KERNEL_OK")
</pallas_src>

<mosaic_0001>
module attributes {stable_mosaic.version = 11 : i64} {
  func.func @_resident_train_kernel(%arg0: i32, %arg1: memref<8x1024xf32, #tpu.memory_space<vmem>>, %arg2: memref<1024x512xbf16, #tpu.memory_space<vmem>>, %arg3: memref<1x512xf32, #tpu.memory_space<vmem>>, %arg4: memref<512x512xbf16, #tpu.memory_space<vmem>>, %arg5: memref<1x512xf32, #tpu.memory_space<vmem>>, %arg6: memref<512x128xbf16, #tpu.memory_space<vmem>>, %arg7: memref<1x128xf32, #tpu.memory_space<vmem>>, %arg8: memref<8x512xf32, #tpu.memory_space<vmem>>, %arg9: memref<8x128xf32, #tpu.memory_space<vmem>>) attributes {dimension_semantics = [#tpu.dimension_semantics<parallel>], iteration_bounds = array<i64: 1>, scalar_prefetch = 0 : i64, scratch_operands = 0 : i64, tpu.core_type = #tpu.core_type<tc>, window_params = [{transform_indices = @transform_0, window_bounds = array<i64: 8, 1024>}, {pipeline_mode = #tpu.pipeline_mode<synchronous>, transform_indices = @transform_1, window_bounds = array<i64: 1024, 512>}, {pipeline_mode = #tpu.pipeline_mode<synchronous>, transform_indices = @transform_2, window_bounds = array<i64: 1, 512>}, {pipeline_mode = #tpu.pipeline_mode<synchronous>, transform_indices = @transform_3, window_bounds = array<i64: 512, 512>}, {pipeline_mode = #tpu.pipeline_mode<synchronous>, transform_indices = @transform_4, window_bounds = array<i64: 1, 512>}, {pipeline_mode = #tpu.pipeline_mode<synchronous>, transform_indices = @transform_5, window_bounds = array<i64: 512, 128>}, {pipeline_mode = #tpu.pipeline_mode<synchronous>, transform_indices = @transform_6, window_bounds = array<i64: 1, 128>}, {transform_indices = @transform_7, window_bounds = array<i64: 8, 512>}, {transform_indices = @transform_8, window_bounds = array<i64: 8, 128>}]} {
    %c0 = arith.constant 0 : index
    %c0_0 = arith.constant 0 : index
    %0 = vector.load %arg1[%c0, %c0_0] : memref<8x1024xf32, #tpu.memory_space<vmem>>, vector<8x1024xf32>
    %1 = arith.truncf %0 : vector<8x1024xf32> to vector<8x1024xbf16>
    %c0_1 = arith.constant 0 : index
    %c0_2 = arith.constant 0 : index
    %2 = vector.load %arg2[%c0_1, %c0_2] : memref<1024x512xbf16, #tpu.memory_space<vmem>>, vector<1024x512xbf16>
    %cst = arith.constant dense<0.000000e+00> : vector<8x512xf32>
    %3 = tpu.matmul %1, %2, %cst {dimension_numbers = #tpu.dot_dimension_numbers<[1], [0], [0], [1], [0, 0, 1, 1], [], []>} : vector<8x1024xbf16>, vector<1024x512xbf16>, vector<8x512xf32> -> vector<8x512xf32>
    %c0_3 = arith.constant 0 : index
    %c0_4 = arith.constant 0 : index
    %4 = vector.load %arg3[%c0_3, %c0_4] : memref<1x512xf32, #tpu.memory_space<vmem>>, vector<1x512xf32>
    %5 = vector.broadcast %4 : vector<1x512xf32> to vector<8x512xf32>
    %6 = arith.addf %3, %5 : vector<8x512xf32>
    %7 = arith.truncf %6 : vector<8x512xf32> to vector<8x512xbf16>
    %c0_5 = arith.constant 0 : index
    %c0_6 = arith.constant 0 : index
    %8 = vector.load %arg4[%c0_5, %c0_6] : memref<512x512xbf16, #tpu.memory_space<vmem>>, vector<512x512xbf16>
    %cst_7 = arith.constant dense<0.000000e+00> : vector<8x512xf32>
    %9 = tpu.matmul %7, %8, %cst_7 {dimension_numbers = #tpu.dot_dimension_numbers<[1], [0], [0], [1], [0, 0, 1, 1], [], []>} : vector<8x512xbf16>, vector<512x512xbf16>, vector<8x512xf32> -> vector<8x512xf32>
    %c0_8 = arith.constant 0 : index
    %c0_9 = arith.constant 0 : index
    %10 = vector.load %arg5[%c0_8, %c0_9] : memref<1x512xf32, #tpu.memory_space<vmem>>, vector<1x512xf32>
    %11 = vector.broadcast %10 : vector<1x512xf32> to vector<8x512xf32>
    %12 = arith.addf %9, %11 : vector<8x512xf32>
    %c0_10 = arith.constant 0 : index
    %c0_11 = arith.constant 0 : index
    %13 = vector.load %arg6[%c0_10, %c0_11] : memref<512x128xbf16, #tpu.memory_space<vmem>>, vector<512x128xbf16>
    %cst_12 = arith.constant dense<0.000000e+00> : vector<8x128xf32>
    %14 = tpu.matmul %7, %13, %cst_12 {dimension_numbers = #tpu.dot_dimension_numbers<[1], [0], [0], [1], [0, 0, 1, 1], [], []>} : vector<8x512xbf16>, vector<512x128xbf16>, vector<8x128xf32> -> vector<8x128xf32>
    %c0_13 = arith.constant 0 : index
    %c0_14 = arith.constant 0 : index
    %15 = vector.load %arg7[%c0_13, %c0_14] : memref<1x128xf32, #tpu.memory_space<vmem>>, vector<1x128xf32>
    %16 = vector.broadcast %15 : vector<1x128xf32> to vector<8x128xf32>
    %17 = arith.addf %14, %16 : vector<8x128xf32>
    %18 = arith.mulf %12, %12 : vector<8x512xf32>
    %cst_15 = arith.constant dense<0.000000e+00> : vector<8xf32>
    %19 = vector.multi_reduction <add>, %18, %cst_15 [1] : vector<8x512xf32> to vector<8xf32>
    %20 = vector.shape_cast %19 : vector<8xf32> to vector<8x1xf32>
    %cst_16 = arith.constant 1.000000e-24 : f32
    %21 = vector.broadcast %cst_16 : f32 to vector<8x1xf32>
    %22 = arith.maximumf %20, %21 : vector<8x1xf32>
    %23 = math.rsqrt %22 : vector<8x1xf32>
    %24 = vector.broadcast %23 : vector<8x1xf32> to vector<8x512xf32>
    %25 = arith.mulf %12, %24 : vector<8x512xf32>
    %26 = arith.mulf %17, %17 : vector<8x128xf32>
    %cst_17 = arith.constant dense<0.000000e+00> : vector<8xf32>
    %27 = vector.multi_reduction <add>, %26, %cst_17 [1] : vector<8x128xf32> to vector<8xf32>
    %28 = vector.shape_cast %27 : vector<8xf32> to vector<8x1xf32>
    %cst_18 = arith.constant 1.000000e-24 : f32
    %29 = vector.broadcast %cst_18 : f32 to vector<8x1xf32>
    %30 = arith.maximumf %28, %29 : vector<8x1xf32>
    %31 = math.rsqrt %30 : vector<8x1xf32>
    %32 = vector.broadcast %31 : vector<8x1xf32> to vector<8x128xf32>
    %33 = arith.mulf %17, %32 : vector<8x128xf32>
    %c0_19 = arith.constant 0 : index
    %c0_20 = arith.constant 0 : index
    %34 = vector.load %arg8[%c0_19, %c0_20] : memref<8x512xf32, #tpu.memory_space<vmem>>, vector<8x512xf32>
    tpu.vector_store %arg8[%c0_19, %c0_20], %25 {strides = array<i32>} : memref<8x512xf32, #tpu.memory_space<vmem>>, vector<8x512xf32>,
    %c0_21 = arith.constant 0 : index
    %c0_22 = arith.constant 0 : index
    %35 = vector.load %arg9[%c0_21, %c0_22] : memref<8x128xf32, #tpu.memory_space<vmem>>, vector<8x128xf32>
    tpu.vector_store %arg9[%c0_21, %c0_22], %33 {strides = array<i32>} : memref<8x128xf32, #tpu.memory_space<vmem>>, vector<8x128xf32>,
    return
  }
  func.func @transform_0(%arg0: i32) -> (i32, i32) {
    %c0_i32 = arith.constant 0 : i32
    %c0_i32_0 = arith.constant 0 : i32
    return %arg0, %c0_i32 : i32, i32
  }
  func.func @transform_1(%arg0: i32) -> (i32, i32) {
    %c0_i32 = arith.constant 0 : i32
    %c0_i32_0 = arith.constant 0 : i32
    %c0_i32_1 = arith.constant 0 : i32
    return %c0_i32, %c0_i32_0 : i32, i32
  }
  func.func @transform_2(%arg0: i32) -> (i32, i32) {
    %c0_i32 = arith.constant 0 : i32
    %c0_i32_0 = arith.constant 0 : i32
    %c0_i32_1 = arith.constant 0 : i32
    return %c0_i32, %c0_i32_0 : i32, i32
  }
  func.func @transform_3(%arg0: i32) -> (i32, i32) {
    %c0_i32 = arith.constant 0 : i32
    %c0_i32_0 = arith.constant 0 : i32
    %c0_i32_1 = arith.constant 0 : i32
    return %c0_i32, %c0_i32_0 : i32, i32
  }
  func.func @transform_4(%arg0: i32) -> (i32, i32) {
    %c0_i32 = arith.constant 0 : i32
    %c0_i32_0 = arith.constant 0 : i32
    %c0_i32_1 = arith.constant 0 : i32
    return %c0_i32, %c0_i32_0 : i32, i32
  }
  func.func @transform_5(%arg0: i32) -> (i32, i32) {
    %c0_i32 = arith.constant 0 : i32
    %c0_i32_0 = arith.constant 0 : i32
    %c0_i32_1 = arith.constant 0 : i32
    return %c0_i32, %c0_i32_0 : i32, i32
  }
  func.func @transform_6(%arg0: i32) -> (i32, i32) {
    %c0_i32 = arith.constant 0 : i32
    %c0_i32_0 = arith.constant 0 : i32
    %c0_i32_1 = arith.constant 0 : i32
    return %c0_i32, %c0_i32_0 : i32, i32
  }
  func.func @transform_7(%arg0: i32) -> (i32, i32) {
    %c0_i32 = arith.constant 0 : i32
    %c0_i32_0 = arith.constant 0 : i32
    return %arg0, %c0_i32 : i32, i32
  }
  func.func @transform_8(%arg0: i32) -> (i32, i32) {
    %c0_i32 = arith.constant 0 : i32
    %c0_i32_0 = arith.constant 0 : i32
    return %arg0, %c0_i32 : i32, i32
  }
}

</mosaic_0001>

<bundles_post_ra>
// kernel: tpu_custom_call.1
= control target key start
LH: loop header
LB: loop body
LE: loop exit
PB: predicated region body
PF: predicated region fallthrough
CT: control target
= control target key end

     0   :  { %14 = vsyncpa [#allocation3], 0  ;;  %s4802_s0 = inlined_call_operand.hbm [shape: f32[8,1024], index: 0, kind: input, shape index: {}]   ;;  %s4803_s1 = inlined_call_operand.hbm [shape: bf16[1024,512], index: 1, kind: input, shape index: {}]   ;;  %s4804_s2 = inlined_call_operand.vmem [shape: f32[1,512], index: 2, kind: input, shape index: {}]   ;;  %s4805_s3 = inlined_call_operand.hbm [shape: bf16[512,512], index: 3, kind: input, shape index: {}]   ;;  %s4806_s4 = inlined_call_operand.vmem [shape: f32[1,512], index: 4, kind: input, shape index: {}]   ;;  %s4807_s5 = inlined_call_operand.hbm [shape: bf16[512,128], index: 5, kind: input, shape index: {}]   ;;  %s4808_s6 = inlined_call_operand.vmem [shape: f32[1,128], index: 6, kind: input, shape index: {}]   ;;  %s4809_s7 = inlined_call_operand.hbm [shape: f32[8,512], index: 7, kind: output, shape index: {0}]   ;;  %s4810_s8 = inlined_call_operand.hbm [shape: f32[8,128], index: 8, kind: output, shape index: {1}]  }
   0x1   :  { %15 = vsyncpa [#allocation6], 0 }
   0x2   :  { %16 = vsyncpa [#allocation9], 0 }
   0x3   :  { %17 = vsyncpa [#allocation4], 0 }
   0x4   :  { %18 = vsyncpa [#allocation12], 0  ;;  %s4609_s27 = smov [#allocation5]   ;;  %s4467_s9 = scalar_lea.hbm %s4803_s1, 32768 }
   0x5   :  { %s34_s28 = sshll.u32 %s4609_s27, 4  ;;  %p4468_p0 = scmp.ne.s32.totalorder %s4803_s1, %s4467_s9  ;;  %s35_s28 = int_to_ptr.vmem [resolvable:$true] %s34_s28 }
   0x6   :  { %p4471_p1 = scmp.lt.u32.totalorder %s4467_s9, %s4803_s1 }
   0x8   :  { %p4473_p2 = pnand %p4471_p1, %p4468_p0 }
   0xa   :  { %4476 = shalt.err (!%p4473_p2)
}
   0xb   :  { %s4477_s14 = scalar_lea.vmem %s35_s28, 32768  ;;  %p4482_p4 = scmp.lt.s32.totalorder %s35_s28, %s35_s28 }
   0xc   :  { %p4478_p3 = scmp.ne.s32.totalorder %s35_s28, %s4477_s14  ;;  %p4483_p5 = scmp.lt.s32.totalorder %s4477_s14, %s4477_s14 }
   0xe   :  { %p4484_p6 = por %p4483_p5, %p4482_p4 }
  0x10   :  { %p4485_p7 = pnand %p4484_p6, %p4478_p3 }
  0x12   :  { %4488 = shalt.err (!%p4485_p7)
}
  0x13   :  { %s4610_s15 = smov 256   ;;  %s4611_s16 = smov 16  }
  0x14   :  { %40 = dma.hbm_to_vmem [thread:$0]  %s4803_s1, 32768, %s35_s28, [#allocation6], %s4610_s15, %s4610_s15, %s4611_s16  }
  0x15   :  { %s4612_s19 = smov [#allocation2]   ;;  %s4613_s21 = smov [#allocation7]  }
  0x16   :  { %s25_s20 = sshll.u32 %s4612_s19, 4  ;;  %s48_s22 = sshll.u32 %s4613_s21, 4  ;;  %s26_s20 = int_to_ptr.vmem [resolvable:$true] %s25_s20  ;;  %s49_s22 = int_to_ptr.vmem [resolvable:$true] %s48_s22 }
  0x17   :  { %s4489_s25 = scalar_lea.hbm %s4802_s0, 1024 }
  0x18   :  { %p4490_p8 = scmp.ne.s32.totalorder %s4802_s0, %s4489_s25  ;;  %p4493_p9 = scmp.lt.u32.totalorder %s4489_s25, %s4802_s0 }
  0x1a   :  { %p4495_p10 = pnand %p4493_p9, %p4490_p8 }
  0x1c   :  { %4498 = shalt.err (!%p4495_p10)
}
  0x1d   :  { %s4499_s1 = scalar_lea.vmem %s26_s20, 1024  ;;  %p4504_p12 = scmp.lt.s32.totalorder %s26_s20, %s26_s20 }
  0x1e   :  { %p4500_p11 = scmp.ne.s32.totalorder %s26_s20, %s4499_s1  ;;  %p4505_p13 = scmp.lt.s32.totalorder %s4499_s1, %s4499_s1 }
  0x20   :  { %p4506_p0 = por %p4505_p13, %p4504_p12 }
  0x22   :  { %p4507_p1 = pnand %p4506_p0, %p4500_p11 }
  0x24   :  { %4510 = shalt.err (!%p4507_p1)
}
  0x25   :  { %28 = dma.hbm_to_vmem [thread:$0]  %s4802_s0, 1024, %s26_s20, [#allocation3]  }
  0x26   :  { %s4511_s12 = scalar_lea.hbm %s4805_s3, 16384 }
  0x27   :  { %p4512_p2 = scmp.ne.s32.totalorder %s4805_s3, %s4511_s12  ;;  %p4515_p3 = scmp.lt.u32.totalorder %s4511_s12, %s4805_s3 }
  0x29   :  { %p4517_p4 = pnand %p4515_p3, %p4512_p2 }
  0x2b   :  { %4520 = shalt.err (!%p4517_p4)
}
  0x2c   :  { %s4521_s19 = scalar_lea.vmem %s49_s22, 16384  ;;  %p4526_p6 = scmp.lt.s32.totalorder %s49_s22, %s49_s22 }
  0x2d   :  { %p4522_p5 = scmp.ne.s32.totalorder %s49_s22, %s4521_s19  ;;  %p4527_p7 = scmp.lt.s32.totalorder %s4521_s19, %s4521_s19 }
  0x2f   :  { %p4528_p8 = por %p4527_p7, %p4526_p6 }
  0x31   :  { %p4529_p9 = pnand %p4528_p8, %p4522_p5 }
  0x33   :  { %4532 = shalt.err (!%p4529_p9)
}
  0x34   :  { %54 = dma.hbm_to_vmem [thread:$0]  %s4805_s3, 16384, %s49_s22, [#allocation6], %s4610_s15, %s4610_s15, %s4611_s16  }
  0x35   :  { %s4614_s21 = smov [#allocation8]   ;;  %s4533_s26 = scalar_lea.hbm %s4807_s5, 4096 }
  0x36   :  { %s62_s23 = sshll.u32 %s4614_s21, 4  ;;  %p4534_p10 = scmp.ne.s32.totalorder %s4807_s5, %s4533_s26  ;;  %s63_s23 = int_to_ptr.vmem [resolvable:$true] %s62_s23 }
  0x37   :  { %p4537_p11 = scmp.lt.u32.totalorder %s4533_s26, %s4807_s5 }
  0x39   :  { %p4539_p12 = pnand %p4537_p11, %p4534_p10 }
  0x3b   :  { %4542 = shalt.err (!%p4539_p12)
}
  0x3c   :  { %s4543_s28 = scalar_lea.vmem %s63_s23, 4096  ;;  %p4548_p0 = scmp.lt.s32.totalorder %s63_s23, %s63_s23 }
  0x3d   :  { %p4544_p13 = scmp.ne.s32.totalorder %s63_s23, %s4543_s28  ;;  %p4549_p1 = scmp.lt.s32.totalorder %s4543_s28, %s4543_s28 }
  0x3f   :  { %p4550_p2 = por %p4549_p1, %p4548_p0 }
  0x41   :  { %p4551_p3 = pnand %p4550_p2, %p4544_p13 }
  0x43   :  { %4554 = shalt.err (!%p4551_p3)
}
  0x44   :  { %s4615_s3 = smov 64   ;;  %s4616_s15 = smov 4  }
  0x45   :  { %68 = dma.hbm_to_vmem [thread:$0]  %s4807_s5, 4096, %s63_s23, [#allocation9], %s4615_s3, %s4615_s3, %s4616_s15  }
  0x46   :  { %4599 = dma.done.wait [#allocation3], 1024  }
  0x47   :  { %4600 = vsyncadd [#allocation3], 4294966272 }
  0x48   :  { %4601 = dma.done.wait [#allocation6], 49152  }
  0x49   :  { %4602 = vsyncadd [#allocation6], 4294918144 }
  0x4a   :  { %4603 = dma.done.wait [#allocation9], 4096  }
  0x4b   :  { %4604 = vsyncadd [#allocation9], 4294963200  ;;  %v3855_v0 = vld [vmem:[#allocation5 + $0x4] ss:$16 sps:$4 sm:$0xff]   ;;  %v3857_v1 = vld [vmem:[#allocation5 + $0xc] ss:$16 sps:$4 sm:$0xff]  }
  0x4c   :  { %1658 = vmatprep.subr.bf16.mxu0 %v3855_v0  ;;  %v3859_v2 = vld [vmem:[#allocation5] ss:$16 sps:$4 sm:$0xff]   ;;  %v3860_v3 = vld [vmem:[#allocation5 + $0x8] ss:$16 sps:$4 sm:$0xff]   ;;  %1822 = vmatprep.subr.bf16.mxu1 %v3857_v1  ;;  %v3861_v4 = vld [vmem:[#allocation5 + $0x24] ss:$16 sps:$4 sm:$0xff]  }
  0x4d   :  { %1659 = vmatpush1.bf16.msra.mxu0 %v3859_v2  ;;  %1823 = vmatpush1.bf16.msra.mxu1 %v3860_v3  ;;  %v3863_v5 = vld [vmem:[#allocation5 + $0x2c] ss:$16 sps:$4 sm:$0xff]   ;;  %v3865_v6 = vld [vmem:[#allocation5 + $0x20] ss:$16 sps:$4 sm:$0xff]   ;;  %v3866_v7 = vld [vmem:[#allocation5 + $0x28] ss:$16 sps:$4 sm:$0xff]  }
  0x4e   :  { %1660 = vmatprep.subr.bf16.mxu0 %v3861_v4  ;;  %1824 = vmatprep.subr.bf16.mxu1 %v3863_v5  ;;  %v3867_v8 = vld [vmem:[#allocation5 + $0x44] ss:$16 sps:$4 sm:$0xff]   ;;  %v3869_v9 = vld [vmem:[#allocation5 + $0x4c] ss:$16 sps:$4 sm:$0xff]   ;;  %v3871_v10 = vld [vmem:[#allocation5 + $0x40] ss:$16 sps:$4 sm:$0xff]  }
  0x4f   :  { %v3872_v11 = vld [vmem:[#allocation5 + $0x48] ss:$16 sps:$4 sm:$0xff]   ;;  %v3873_v12 = vld [vmem:[#allocation5 + $0x64] ss:$16 sps:$4 sm:$0xff]   ;;  %v3875_v13 = vld [vmem:[#allocation5 + $0x6c] ss:$16 sps:$4 sm:$0xff]  }
  0x50   :  { %v3877_v14 = vld [vmem:[#allocation5 + $0x60] ss:$16 sps:$4 sm:$0xff]   ;;  %v3878_v15 = vld [vmem:[#allocation5 + $0x68] ss:$16 sps:$4 sm:$0xff]   ;;  %v3879_v16 = vld [vmem:[#allocation5 + $0x84] ss:$16 sps:$4 sm:$0xff]  }
  0x51   :  { %1661 = vmatpush1.bf16.msra.mxu0 %v3865_v6  ;;  %1825 = vmatpush1.bf16.msra.mxu1 %v3866_v7  ;;  %v3881_v17 = vld [vmem:[#allocation5 + $0x8c] ss:$16 sps:$4 sm:$0xff]   ;;  %v3883_v18 = vld [vmem:[#allocation5 + $0x80] ss:$16 sps:$4 sm:$0xff]   ;;  %v3884_v19 = vld [vmem:[#allocation5 + $0x88] ss:$16 sps:$4 sm:$0xff]  }
  0x52   :  { %1662 = vmatprep.subr.bf16.mxu0 %v3867_v8  ;;  %1826 = vmatprep.subr.bf16.mxu1 %v3869_v9  ;;  %v3885_v20 = vld [vmem:[#allocation5 + $0xa4] ss:$16 sps:$4 sm:$0xff]   ;;  %v3887_v21 = vld [vmem:[#allocation5 + $0xac] ss:$16 sps:$4 sm:$0xff]   ;;  %v3889_v22 = vld [vmem:[#allocation5 + $0xa0] ss:$16 sps:$4 sm:$0xff]  }
  0x53   :  { %v3890_v23 = vld [vmem:[#allocation5 + $0xa8] ss:$16 sps:$4 sm:$0xff]   ;;  %v3891_v24 = vld [vmem:[#allocation5 + $0xc4] ss:$16 sps:$4 sm:$0xff]   ;;  %v3893_v25 = vld [vmem:[#allocation5 + $0xcc] ss:$16 sps:$4 sm:$0xff]  }
  0x54   :  { %v3895_v26 = vld [vmem:[#allocation5 + $0xc0] ss:$16 sps:$4 sm:$0xff]   ;;  %v3896_v27 = vld [vmem:[#allocation5 + $0xc8] ss:$16 sps:$4 sm:$0xff]   ;;  %v3897_v28 = vld [vmem:[#allocation5 + $0xe4] ss:$16 sps:$4 sm:$0xff]  }
  0x55   :  { %1663 = vmatpush1.bf16.msra.mxu0 %v3871_v10  ;;  %1827 = vmatpush1.bf16.msra.mxu1 %v3872_v11  ;;  %v3899_v29 = vld [vmem:[#allocation5 + $0xec] ss:$16 sps:$4 sm:$0xff]   ;;  %v3901_v30 = vld [vmem:[#allocation5 + $0xe0] ss:$16 sps:$4 sm:$0xff]   ;;  %v3902_v31 = vld [vmem:[#allocation5 + $0xe8] ss:$16 sps:$4 sm:$0xff]  }
  0x56   :  { %1664 = vmatprep.subr.bf16.mxu0 %v3873_v12  ;;  %1828 = vmatprep.subr.bf16.mxu1 %v3875_v13  ;;  %v3903_v32 = vld [vmem:[#allocation5 + $0x104] ss:$16 sps:$4 sm:$0xff]   ;;  %v3905_v33 = vld [vmem:[#allocation5 + $0x10c] ss:$16 sps:$4 sm:$0xff]   ;;  %v3907_v34 = vld [vmem:[#allocation5 + $0x100] ss:$16 sps:$4 sm:$0xff]  }
  0x57   :  { %v3908_v35 = vld [vmem:[#allocation5 + $0x108] ss:$16 sps:$4 sm:$0xff]   ;;  %v3909_v36 = vld [vmem:[#allocation5 + $0x124] ss:$16 sps:$4 sm:$0xff]   ;;  %v3911_v37 = vld [vmem:[#allocation5 + $0x12c] ss:$16 sps:$4 sm:$0xff]  }
  0x58   :  { %v3913_v38 = vld [vmem:[#allocation5 + $0x120] ss:$16 sps:$4 sm:$0xff]   ;;  %v3914_v39 = vld [vmem:[#allocation5 + $0x128] ss:$16 sps:$4 sm:$0xff]   ;;  %v3915_v40 = vld [vmem:[#allocation5 + $0x144] ss:$16 sps:$4 sm:$0xff]  }
  0x59   :  { %1665 = vmatpush1.bf16.msra.mxu0 %v3877_v14  ;;  %1829 = vmatpush1.bf16.msra.mxu1 %v3878_v15  ;;  %v3917_v41 = vld [vmem:[#allocation5 + $0x14c] ss:$16 sps:$4 sm:$0xff]   ;;  %v3919_v42 = vld [vmem:[#allocation5 + $0x140] ss:$16 sps:$4 sm:$0xff]   ;;  %v3920_v43 = vld [vmem:[#allocation5 + $0x148] ss:$16 sps:$4 sm:$0xff]  }
  0x5a   :  { %1666 = vmatprep.subr.bf16.mxu0 %v3879_v16  ;;  %1830 = vmatprep.subr.bf16.mxu1 %v3881_v17  ;;  %v3921_v44 = vld [vmem:[#allocation5 + $0x164] ss:$16 sps:$4 sm:$0xff]   ;;  %v3923_v45 = vld [vmem:[#allocation5 + $0x16c] ss:$16 sps:$4 sm:$0xff]   ;;  %v3925_v47 = vld [vmem:[#allocation5 + $0x160] ss:$16 sps:$4 sm:$0xff]  }
  0x5b   :  { %v85_v46 = vld [vmem:[#allocation2 + $0x8] sm:$0xff]  ;;  %v3927_v50 = vld [vmem:[#allocation5 + $0x184] ss:$16 sps:$4 sm:$0xff]   ;;  %v3931_v52 = vld [vmem:[#allocation5 + $0x180] ss:$16 sps:$4 sm:$0xff]   ;;  %s4617_s12 = smov [#allocation10]  }
  0x5c   :  { %v93_v48 = vpack.c.bf16 %v85_v46, %v85_v46  ;;  %v3926_v49 = vld [vmem:[#allocation5 + $0x168] ss:$16 sps:$4 sm:$0xff]   ;;  %v3929_v51 = vld [vmem:[#allocation5 + $0x18c] ss:$16 sps:$4 sm:$0xff]   ;;  %v3933_v54 = vld [vmem:[#allocation5 + $0x1a4] ss:$16 sps:$4 sm:$0xff]  }
  0x5d   :  { %1667 = vmatpush1.bf16.msra.mxu0 %v3883_v18  ;;  %1831 = vmatpush1.bf16.msra.mxu1 %v3884_v19  ;;  %v3932_v53 = vld [vmem:[#allocation5 + $0x188] ss:$16 sps:$4 sm:$0xff]   ;;  %v3935_v55 = vld [vmem:[#allocation5 + $0x1ac] ss:$16 sps:$4 sm:$0xff]   ;;  %v3937_v56 = vld [vmem:[#allocation5 + $0x1a0] ss:$16 sps:$4 sm:$0xff]  }
  0x5e   :  { %1668 = vmatprep.subr.bf16.mxu0 %v3885_v20  ;;  %1832 = vmatprep.subr.bf16.mxu1 %v3887_v21  ;;  %v3938_v57 = vld [vmem:[#allocation5 + $0x1a8] ss:$16 sps:$4 sm:$0xff]   ;;  %v3939_v58 = vld [vmem:[#allocation5 + $0x1c4] ss:$16 sps:$4 sm:$0xff]   ;;  %v3941_v59 = vld [vmem:[#allocation5 + $0x1cc] ss:$16 sps:$4 sm:$0xff]  }
  0x5f   :  { %1690 = vmatprep.mubr.bf16.mxu0 %v93_v48  ;;  %1854 = vmatprep.mubr.bf16.mxu1 %v93_v48  ;;  %v3943_v60 = vld [vmem:[#allocation5 + $0x1c0] ss:$16 sps:$4 sm:$0xff]   ;;  %v3944_v61 = vld [vmem:[#allocation5 + $0x1c8] ss:$16 sps:$4 sm:$0xff]   ;;  %v3945_v62 = vld [vmem:[#allocation5 + $0x1e4] ss:$16 sps:$4 sm:$0xff]  }
  0x60   :  { %v3947_v63 = vld [vmem:[#allocation5 + $0x1ec] ss:$16 sps:$4 sm:$0xff]   ;;  %v3949_v0 = vld [vmem:[#allocation5 + $0x1e0] ss:$16 sps:$4 sm:$0xff]   ;;  %v3950_v1 = vld [vmem:[#allocation5 + $0x1e8] ss:$16 sps:$4 sm:$0xff]  }
  0x61   :  { %1669 = vmatpush1.bf16.msra.mxu0 %v3889_v22  ;;  %1833 = vmatpush1.bf16.msra.mxu1 %v3890_v23  ;;  %v84_v2 = vld [vmem:[#allocation2] sm:$0xff]  ;;  %v3956_v4 = vld [vmem:[#allocation5 + $0x20c] ss:$16 sps:$4 sm:$0xff]   ;;  %v3954_v7 = vld [vmem:[#allocation5 + $0x208] ss:$16 sps:$4 sm:$0xff]   ;;  %s3319_s13 = sshll.u32 %s4617_s12, 4  ;;  %s3320_s13 = int_to_ptr.vmem [resolvable:$true] %s3319_s13 }
  0x62   :  { %1670 = vmatprep.subr.bf16.mxu0 %v3891_v24  ;;  %1834 = vmatprep.subr.bf16.mxu1 %v3893_v25  ;;  %v3953_v3 = vld [vmem:[#allocation5 + $0x204] ss:$16 sps:$4 sm:$0xff]   ;;  %v92_v5 = vpack.c.bf16 %v84_v2, %v84_v2  ;;  %v3951_v6 = vld [vmem:[#allocation5 + $0x200] ss:$16 sps:$4 sm:$0xff]   ;;  %v3962_v9 = vld [vmem:[#allocation5 + $0x22c] ss:$16 sps:$4 sm:$0xff]   ;;  %p4560_p5 = scmp.lt.s32.totalorder %s3320_s13, %s3320_s13 }
  0x63   :  { %v3959_v8 = vld [vmem:[#allocation5 + $0x224] ss:$16 sps:$4 sm:$0xff]   ;;  %v3957_v10 = vld [vmem:[#allocation5 + $0x220] ss:$16 sps:$4 sm:$0xff]   ;;  %v3960_v11 = vld [vmem:[#allocation5 + $0x228] ss:$16 sps:$4 sm:$0xff]  }
  0x64   :  { %v3965_v12 = vld [vmem:[#allocation5 + $0x244] ss:$16 sps:$4 sm:$0xff]   ;;  %v3968_v13 = vld [vmem:[#allocation5 + $0x24c] ss:$16 sps:$4 sm:$0xff]   ;;  %v3963_v14 = vld [vmem:[#allocation5 + $0x240] ss:$16 sps:$4 sm:$0xff]  }
  0x65   :  { %1671 = vmatpush1.bf16.msra.mxu0 %v3895_v26  ;;  %1835 = vmatpush1.bf16.msra.mxu1 %v3896_v27  ;;  %v3966_v15 = vld [vmem:[#allocation5 + $0x248] ss:$16 sps:$4 sm:$0xff]   ;;  %v3971_v16 = vld [vmem:[#allocation5 + $0x264] ss:$16 sps:$4 sm:$0xff]   ;;  %v3974_v17 = vld [vmem:[#allocation5 + $0x26c] ss:$16 sps:$4 sm:$0xff]  }
  0x66   :  { %1672 = vmatprep.subr.bf16.mxu0 %v3897_v28  ;;  %1836 = vmatprep.subr.bf16.mxu1 %v3899_v29  ;;  %v3969_v18 = vld [vmem:[#allocation5 + $0x260] ss:$16 sps:$4 sm:$0xff]   ;;  %v3972_v19 = vld [vmem:[#allocation5 + $0x268] ss:$16 sps:$4 sm:$0xff]   ;;  %v3977_v20 = vld [vmem:[#allocation5 + $0x284] ss:$16 sps:$4 sm:$0xff]  }
  0x67   :  { %v3980_v21 = vld [vmem:[#allocation5 + $0x28c] ss:$16 sps:$4 sm:$0xff]   ;;  %v3975_v22 = vld [vmem:[#allocation5 + $0x280] ss:$16 sps:$4 sm:$0xff]   ;;  %v3978_v23 = vld [vmem:[#allocation5 + $0x288] ss:$16 sps:$4 sm:$0xff]  }
  0x68   :  { %v3983_v24 = vld [vmem:[#allocation5 + $0x2a4] ss:$16 sps:$4 sm:$0xff]   ;;  %v3986_v25 = vld [vmem:[#allocation5 + $0x2ac] ss:$16 sps:$4 sm:$0xff]   ;;  %v3981_v26 = vld [vmem:[#allocation5 + $0x2a0] ss:$16 sps:$4 sm:$0xff]  }
  0x69   :  { %1673 = vmatpush1.bf16.msra.mxu0 %v3901_v30  ;;  %1837 = vmatpush1.bf16.msra.mxu1 %v3902_v31  ;;  %v3984_v27 = vld [vmem:[#allocation5 + $0x2a8] ss:$16 sps:$4 sm:$0xff]   ;;  %v3989_v28 = vld [vmem:[#allocation5 + $0x2c4] ss:$16 sps:$4 sm:$0xff]   ;;  %v3992_v29 = vld [vmem:[#allocation5 + $0x2cc] ss:$16 sps:$4 sm:$0xff]  }
  0x6a   :  { %1674 = vmatprep.subr.bf16.mxu0 %v3903_v32  ;;  %1838 = vmatprep.subr.bf16.mxu1 %v3905_v33  ;;  %v87_v30 = vld [vmem:[#allocation2 + $0x18] sm:$0xff]  ;;  %v3987_v31 = vld [vmem:[#allocation5 + $0x2c0] ss:$16 sps:$4 sm:$0xff]   ;;  %v4013_v46 = vld [vmem:[#allocation5 + $0x344] ss:$16 sps:$4 sm:$0xff]  }
  0x6b   :  { %v95_v32 = vpack.c.bf16 %v87_v30, %v87_v30  ;;  %v3990_v33 = vld [vmem:[#allocation5 + $0x2c8] ss:$16 sps:$4 sm:$0xff]   ;;  %v4011_v48 = vld [vmem:[#allocation5 + $0x340] ss:$16 sps:$4 sm:$0xff]   ;;  %v4043_v2 = vld [vmem:[#allocation5 + $0x3e4] ss:$16 sps:$4 sm:$0xff]  }
  0x6c   :  { %v4079_v30 = vld [vmem:[#allocation5 + $0x4a4] ss:$16 sps:$4 sm:$0xff]  }
  0x6d   :  { %1675 = vmatpush1.bf16.msra.mxu0 %v3907_v34  ;;  %1839 = vmatpush1.bf16.msra.mxu1 %v3908_v35  ;;  %v3995_v34 = vld [vmem:[#allocation5 + $0x2e4] ss:$16 sps:$4 sm:$0xff]   ;;  %v3998_v35 = vld [vmem:[#allocation5 + $0x2ec] ss:$16 sps:$4 sm:$0xff]  }
  0x6e   :  { %1676 = vmatprep.subr.bf16.mxu0 %v3909_v36  ;;  %1840 = vmatprep.subr.bf16.mxu1 %v3911_v37  ;;  %v3993_v36 = vld [vmem:[#allocation5 + $0x2e0] ss:$16 sps:$4 sm:$0xff]   ;;  %v3996_v37 = vld [vmem:[#allocation5 + $0x2e8] ss:$16 sps:$4 sm:$0xff]  }
  0x71   :  { %1677 = vmatpush1.bf16.msra.mxu0 %v3913_v38  ;;  %1841 = vmatpush1.bf16.msra.mxu1 %v3914_v39  ;;  %v4001_v38 = vld [vmem:[#allocation5 + $0x304] ss:$16 sps:$4 sm:$0xff]   ;;  %v4004_v39 = vld [vmem:[#allocation5 + $0x30c] ss:$16 sps:$4 sm:$0xff]  }
  0x72   :  { %1678 = vmatprep.subr.bf16.mxu0 %v3915_v40  ;;  %1842 = vmatprep.subr.bf16.mxu1 %v3917_v41  ;;  %v3999_v40 = vld [vmem:[#allocation5 + $0x300] ss:$16 sps:$4 sm:$0xff]   ;;  %v4002_v41 = vld [vmem:[#allocation5 + $0x308] ss:$16 sps:$4 sm:$0xff]  }
  0x75   :  { %1679 = vmatpush1.bf16.msra.mxu0 %v3919_v42  ;;  %1843 = vmatpush1.bf16.msra.mxu1 %v3920_v43  ;;  %v4007_v42 = vld [vmem:[#allocation5 + $0x324] ss:$16 sps:$4 sm:$0xff]   ;;  %v4010_v43 = vld [vmem:[#allocation5 + $0x32c] ss:$16 sps:$4 sm:$0xff]  }
  0x76   :  { %1680 = vmatprep.subr.bf16.mxu0 %v3921_v44  ;;  %1844 = vmatprep.subr.bf16.mxu1 %v3923_v45  ;;  %v4005_v44 = vld [vmem:[#allocation5 + $0x320] ss:$16 sps:$4 sm:$0xff]   ;;  %v4008_v45 = vld [vmem:[#allocation5 + $0x328] ss:$16 sps:$4 sm:$0xff]  }
  0x79   :  { %1681 = vmatpush1.bf16.msra.mxu0 %v3925_v47  ;;  %1845 = vmatpush1.bf16.msra.mxu1 %v3926_v49  ;;  %v4016_v47 = vld [vmem:[#allocation5 + $0x34c] ss:$16 sps:$4 sm:$0xff]   ;;  %v4014_v49 = vld [vmem:[#allocation5 + $0x348] ss:$16 sps:$4 sm:$0xff]  }
  0x7a   :  { %1682 = vmatprep.subr.bf16.mxu0 %v3927_v50  ;;  %1846 = vmatprep.subr.bf16.mxu1 %v3929_v51  ;;  %v4019_v50 = vld [vmem:[#allocation5 + $0x364] ss:$16 sps:$4 sm:$0xff]   ;;  %v4022_v51 = vld [vmem:[#allocation5 + $0x36c] ss:$16 sps:$4 sm:$0xff]  }
  0x7d   :  { %1683 = vmatpush1.bf16.msra.mxu0 %v3931_v52  ;;  %1847 = vmatpush1.bf16.msra.mxu1 %v3932_v53  ;;  %v4017_v52 = vld [vmem:[#allocation5 + $0x360] ss:$16 sps:$4 sm:$0xff]   ;;  %v4020_v53 = vld [vmem:[#allocation5 + $0x368] ss:$16 sps:$4 sm:$0xff]  }
  0x7e   :  { %1684 = vmatprep.subr.bf16.mxu0 %v3933_v54  ;;  %1848 = vmatprep.subr.bf16.mxu1 %v3935_v55  ;;  %v4025_v54 = vld [vmem:[#allocation5 + $0x384] ss:$16 sps:$4 sm:$0xff]   ;;  %v4028_v55 = vld [vmem:[#allocation5 + $0x38c] ss:$16 sps:$4 sm:$0xff]  }
  0x81   :  { %1685 = vmatpush1.bf16.msra.mxu0 %v3937_v56  ;;  %1849 = vmatpush1.bf16.msra.mxu1 %v3938_v57  ;;  %v4023_v56 = vld [vmem:[#allocation5 + $0x380] ss:$16 sps:$4 sm:$0xff]   ;;  %v4026_v57 = vld [vmem:[#allocation5 + $0x388] ss:$16 sps:$4 sm:$0xff]  }
  0x82   :  { %1686 = vmatprep.subr.bf16.mxu0 %v3939_v58  ;;  %1850 = vmatprep.subr.bf16.mxu1 %v3941_v59  ;;  %v4031_v58 = vld [vmem:[#allocation5 + $0x3a4] ss:$16 sps:$4 sm:$0xff]   ;;  %v4034_v59 = vld [vmem:[#allocation5 + $0x3ac] ss:$16 sps:$4 sm:$0xff]  }
  0x85   :  { %1687 = vmatpush1.bf16.msra.mxu0 %v3943_v60  ;;  %1851 = vmatpush1.bf16.msra.mxu1 %v3944_v61  ;;  %v4029_v60 = vld [vmem:[#allocation5 + $0x3a0] ss:$16 sps:$4 sm:$0xff]   ;;  %v4032_v61 = vld [vmem:[#allocation5 + $0x3a8] ss:$16 sps:$4 sm:$0xff]  }
  0x86   :  { %1688 = vmatprep.subr.bf16.mxu0 %v3945_v62  ;;  %1852 = vmatprep.subr.bf16.mxu1 %v3947_v63  ;;  %v4037_v62 = vld [vmem:[#allocation5 + $0x3c4] ss:$16 sps:$4 sm:$0xff]   ;;  %v4040_v63 = vld [vmem:[#allocation5 + $0x3cc] ss:$16 sps:$4 sm:$0xff]  }
  0x89   :  { %1689 = vmatpush1.bf16.msra.mxu0 %v3949_v0  ;;  %1853 = vmatpush1.bf16.msra.mxu1 %v3950_v1  ;;  %v4035_v0 = vld [vmem:[#allocation5 + $0x3c0] ss:$16 sps:$4 sm:$0xff]   ;;  %v4038_v1 = vld [vmem:[#allocation5 + $0x3c8] ss:$16 sps:$4 sm:$0xff]  }
  0x8a   :  { %1699 = vmatprep.subr.bf16.mxu0 %v3953_v3  ;;  %1863 = vmatprep.subr.bf16.mxu1 %v3956_v4  ;;  %v4046_v3 = vld [vmem:[#allocation5 + $0x3ec] ss:$16 sps:$4 sm:$0xff]   ;;  %v4041_v4 = vld [vmem:[#allocation5 + $0x3e0] ss:$16 sps:$4 sm:$0xff]  }
  0x8c   :  { %1691 = vmatmul.mubr.bf16.vlgmr.msra.gmra.mrb[0].mxu0 %v92_v5  ;;  %1855 = vmatmul.mubr.bf16.vlgmr.msra.gmra.mrb[0].mxu1 %v92_v5  ;;  %v4044_v5 = vld [vmem:[#allocation5 + $0x3e8] ss:$16 sps:$4 sm:$0xff]  }
  0x8d   :  { %1700 = vmatpush1.bf16.msra.mxu0 %v3951_v6  ;;  %1864 = vmatpush1.bf16.msra.mxu1 %v3954_v7  ;;  %v4049_v6 = vld [vmem:[#allocation5 + $0x404] ss:$16 sps:$4 sm:$0xff]  }
  0x8e   :  { %1701 = vmatprep.subr.bf16.mxu0 %v3959_v8  ;;  %1865 = vmatprep.subr.bf16.mxu1 %v3962_v9  ;;  %v86_v7 = vld [vmem:[#allocation2 + $0x10] sm:$0xff]  ;;  %v4052_v8 = vld [vmem:[#allocation5 + $0x40c] ss:$16 sps:$4 sm:$0xff]  }
  0x8f   :  { %1731 = vmatprep.mubr.bf16.mxu0 %v95_v32  ;;  %1895 = vmatprep.mubr.bf16.mxu1 %v95_v32  ;;  %v4047_v9 = vld [vmem:[#allocation5 + $0x400] ss:$16 sps:$4 sm:$0xff]  }
  0x90   :  { %v4077_v32 = vld [vmem:[#allocation5 + $0x4a0] ss:$16 sps:$4 sm:$0xff]  }
  0x91   :  { %1702 = vmatpush1.bf16.msra.mxu0 %v3957_v10  ;;  %1866 = vmatpush1.bf16.msra.mxu1 %v3960_v11  ;;  %v4050_v10 = vld [vmem:[#allocation5 + $0x408] ss:$16 sps:$4 sm:$0xff]   ;;  %v94_v11 = vpack.c.bf16 %v86_v7, %v86_v7  ;;  %v4142_v7 = vld [vmem:[#allocation5 + $0x5ec] ss:$16 sps:$4 sm:$0xff]  }
  0x92   :  { %1703 = vmatprep.subr.bf16.mxu0 %v3965_v12  ;;  %1867 = vmatprep.subr.bf16.mxu1 %v3968_v13  ;;  %v4055_v12 = vld [vmem:[#allocation5 + $0x424] ss:$16 sps:$4 sm:$0xff]   ;;  %v4058_v13 = vld [vmem:[#allocation5 + $0x42c] ss:$16 sps:$4 sm:$0xff]  }
  0x95   :  { %1704 = vmatpush1.bf16.msra.mxu0 %v3963_v14  ;;  %1868 = vmatpush1.bf16.msra.mxu1 %v3966_v15  ;;  %v89_v14 = vld [vmem:[#allocation2 + $0x28] sm:$0xff] }
  0x96   :  { %1705 = vmatprep.subr.bf16.mxu0 %v3971_v16  ;;  %1869 = vmatprep.subr.bf16.mxu1 %v3974_v17  ;;  %v97_v15 = vpack.c.bf16 %v89_v14, %v89_v14  ;;  %v4053_v16 = vld [vmem:[#allocation5 + $0x420] ss:$16 sps:$4 sm:$0xff]   ;;  %v4056_v17 = vld [vmem:[#allocation5 + $0x428] ss:$16 sps:$4 sm:$0xff]  }
  0x97   :  { %v4146_v14 = vld [vmem:[#allocation5 + $0x608] ss:$16 sps:$4 sm:$0xff]  }
  0x99   :  { %1706 = vmatpush1.bf16.msra.mxu0 %v3969_v18  ;;  %1870 = vmatpush1.bf16.msra.mxu1 %v3972_v19  ;;  %v4061_v18 = vld [vmem:[#allocation5 + $0x444] ss:$16 sps:$4 sm:$0xff]   ;;  %v4064_v19 = vld [vmem:[#allocation5 + $0x44c] ss:$16 sps:$4 sm:$0xff]  }
  0x9a   :  { %1707 = vmatprep.subr.bf16.mxu0 %v3977_v20  ;;  %1871 = vmatprep.subr.bf16.mxu1 %v3980_v21  ;;  %v4059_v20 = vld [vmem:[#allocation5 + $0x440] ss:$16 sps:$4 sm:$0xff]   ;;  %v4062_v21 = vld [vmem:[#allocation5 + $0x448] ss:$16 sps:$4 sm:$0xff]  }
  0x9d   :  { %1708 = vmatpush1.bf16.msra.mxu0 %v3975_v22  ;;  %1872 = vmatpush1.bf16.msra.mxu1 %v3978_v23  ;;  %v4067_v22 = vld [vmem:[#allocation5 + $0x464] ss:$16 sps:$4 sm:$0xff]   ;;  %v4070_v23 = vld [vmem:[#allocation5 + $0x46c] ss:$16 sps:$4 sm:$0xff]  }
  0x9e   :  { %1709 = vmatprep.subr.bf16.mxu0 %v3983_v24  ;;  %1873 = vmatprep.subr.bf16.mxu1 %v3986_v25  ;;  %v4065_v24 = vld [vmem:[#allocation5 + $0x460] ss:$16 sps:$4 sm:$0xff]   ;;  %v4068_v25 = vld [vmem:[#allocation5 + $0x468] ss:$16 sps:$4 sm:$0xff]  }
  0xa1   :  { %1710 = vmatpush1.bf16.msra.mxu0 %v3981_v26  ;;  %1874 = vmatpush1.bf16.msra.mxu1 %v3984_v27  ;;  %v4073_v26 = vld [vmem:[#allocation5 + $0x484] ss:$16 sps:$4 sm:$0xff]   ;;  %v4076_v27 = vld [vmem:[#allocation5 + $0x48c] ss:$16 sps:$4 sm:$0xff]  }
  0xa2   :  { %1711 = vmatprep.subr.bf16.mxu0 %v3989_v28  ;;  %1875 = vmatprep.subr.bf16.mxu1 %v3992_v29  ;;  %v4071_v28 = vld [vmem:[#allocation5 + $0x480] ss:$16 sps:$4 sm:$0xff]   ;;  %v4074_v29 = vld [vmem:[#allocation5 + $0x488] ss:$16 sps:$4 sm:$0xff]  }
  0xa5   :  { %1712 = vmatpush1.bf16.msra.mxu0 %v3987_v31  ;;  %1876 = vmatpush1.bf16.msra.mxu1 %v3990_v33  ;;  %v4082_v31 = vld [vmem:[#allocation5 + $0x4ac] ss:$16 sps:$4 sm:$0xff]   ;;  %v4080_v33 = vld [vmem:[#allocation5 + $0x4a8] ss:$16 sps:$4 sm:$0xff]  }
  0xa6   :  { %1713 = vmatprep.subr.bf16.mxu0 %v3995_v34  ;;  %1877 = vmatprep.subr.bf16.mxu1 %v3998_v35  ;;  %v4085_v34 = vld [vmem:[#allocation5 + $0x4c4] ss:$16 sps:$4 sm:$0xff]   ;;  %v4088_v35 = vld [vmem:[#allocation5 + $0x4cc] ss:$16 sps:$4 sm:$0xff]  }
  0xa9   :  { %1714 = vmatpush1.bf16.msra.mxu0 %v3993_v36  ;;  %1878 = vmatpush1.bf16.msra.mxu1 %v3996_v37  ;;  %v4083_v36 = vld [vmem:[#allocation5 + $0x4c0] ss:$16 sps:$4 sm:$0xff]   ;;  %v4086_v37 = vld [vmem:[#allocation5 + $0x4c8] ss:$16 sps:$4 sm:$0xff]  }
  0xaa   :  { %1715 = vmatprep.subr.bf16.mxu0 %v4001_v38  ;;  %1879 = vmatprep.subr.bf16.mxu1 %v4004_v39  ;;  %v4091_v38 = vld [vmem:[#allocation5 + $0x4e4] ss:$16 sps:$4 sm:$0xff]   ;;  %v4094_v39 = vld [vmem:[#allocation5 + $0x4ec] ss:$16 sps:$4 sm:$0xff]  }
  0xad   :  { %1716 = vmatpush1.bf16.msra.mxu0 %v3999_v40  ;;  %1880 = vmatpush1.bf16.msra.mxu1 %v4002_v41  ;;  %v4089_v40 = vld [vmem:[#allocation5 + $0x4e0] ss:$16 sps:$4 sm:$0xff]   ;;  %v4092_v41 = vld [vmem:[#allocation5 + $0x4e8] ss:$16 sps:$4 sm:$0xff]  }
  0xae   :  { %1717 = vmatprep.subr.bf16.mxu0 %v4007_v42  ;;  %1881 = vmatprep.subr.bf16.mxu1 %v4010_v43  ;;  %v4097_v42 = vld [vmem:[#allocation5 + $0x504] ss:$16 sps:$4 sm:$0xff]   ;;  %v4100_v43 = vld [vmem:[#allocation5 + $0x50c] ss:$16 sps:$4 sm:$0xff]  }
  0xb1   :  { %1718 = vmatpush1.bf16.msra.mxu0 %v4005_v44  ;;  %1882 = vmatpush1.bf16.msra.mxu1 %v4008_v45  ;;  %v4095_v44 = vld [vmem:[#allocation5 + $0x500] ss:$16 sps:$4 sm:$0xff]   ;;  %v4098_v45 = vld [vmem:[#allocation5 + $0x508] ss:$16 sps:$4 sm:$0xff]  }
  0xb2   :  { %1719 = vmatprep.subr.bf16.mxu0 %v4013_v46  ;;  %1883 = vmatprep.subr.bf16.mxu1 %v4016_v47  ;;  %v4103_v46 = vld [vmem:[#allocation5 + $0x524] ss:$16 sps:$4 sm:$0xff]   ;;  %v4106_v47 = vld [vmem:[#allocation5 + $0x52c] ss:$16 sps:$4 sm:$0xff]  }
  0xb5   :  { %1720 = vmatpush1.bf16.msra.mxu0 %v4011_v48  ;;  %1884 = vmatpush1.bf16.msra.mxu1 %v4014_v49  ;;  %v4101_v48 = vld [vmem:[#allocation5 + $0x520] ss:$16 sps:$4 sm:$0xff]   ;;  %v4104_v49 = vld [vmem:[#allocation5 + $0x528] ss:$16 sps:$4 sm:$0xff]  }
  0xb6   :  { %1721 = vmatprep.subr.bf16.mxu0 %v4019_v50  ;;  %1885 = vmatprep.subr.bf16.mxu1 %v4022_v51  ;;  %v4109_v50 = vld [vmem:[#allocation5 + $0x544] ss:$16 sps:$4 sm:$0xff]   ;;  %v4112_v51 = vld [vmem:[#allocation5 + $0x54c] ss:$16 sps:$4 sm:$0xff]  }
  0xb9   :  { %1722 = vmatpush1.bf16.msra.mxu0 %v4017_v52  ;;  %1886 = vmatpush1.bf16.msra.mxu1 %v4020_v53  ;;  %v4107_v52 = vld [vmem:[#allocation5 + $0x540] ss:$16 sps:$4 sm:$0xff]   ;;  %v4110_v53 = vld [vmem:[#allocation5 + $0x548] ss:$16 sps:$4 sm:$0xff]  }
  0xba   :  { %1723 = vmatprep.subr.bf16.mxu0 %v4025_v54  ;;  %1887 = vmatprep.subr.bf16.mxu1 %v4028_v55  ;;  %v4115_v54 = vld [vmem:[#allocation5 + $0x564] ss:$16 sps:$4 sm:$0xff]   ;;  %v4118_v55 = vld [vmem:[#allocation5 + $0x56c] ss:$16 sps:$4 sm:$0xff]  }
  0xbd   :  { %1724 = vmatpush1.bf16.msra.mxu0 %v4023_v56  ;;  %1888 = vmatpush1.bf16.msra.mxu1 %v4026_v57  ;;  %v4113_v56 = vld [vmem:[#allocation5 + $0x560] ss:$16 sps:$4 sm:$0xff]   ;;  %v4116_v57 = vld [vmem:[#allocation5 + $0x568] ss:$16 sps:$4 sm:$0xff]  }
  0xbe   :  { %1725 = vmatprep.subr.bf16.mxu0 %v4031_v58  ;;  %1889 = vmatprep.subr.bf16.mxu1 %v4034_v59  ;;  %v4121_v58 = vld [vmem:[#allocation5 + $0x584] ss:$16 sps:$4 sm:$0xff]   ;;  %v4124_v59 = vld [vmem:[#allocation5 + $0x58c] ss:$16 sps:$4 sm:$0xff]  }
  0xc1   :  { %1726 = vmatpush1.bf16.msra.mxu0 %v4029_v60  ;;  %1890 = vmatpush1.bf16.msra.mxu1 %v4032_v61  ;;  %v4119_v60 = vld [vmem:[#allocation5 + $0x580] ss:$16 sps:$4 sm:$0xff]   ;;  %v4122_v61 = vld [vmem:[#allocation5 + $0x588] ss:$16 sps:$4 sm:$0xff]  }
  0xc2   :  { %1727 = vmatprep.subr.bf16.mxu0 %v4037_v62  ;;  %1891 = vmatprep.subr.bf16.mxu1 %v4040_v63  ;;  %v4127_v62 = vld [vmem:[#allocation5 + $0x5a4] ss:$16 sps:$4 sm:$0xff]   ;;  %v4130_v63 = vld [vmem:[#allocation5 + $0x5ac] ss:$16 sps:$4 sm:$0xff]  }
  0xc5   :  { %1728 = vmatpush1.bf16.msra.mxu0 %v4035_v0  ;;  %1892 = vmatpush1.bf16.msra.mxu1 %v4038_v1  ;;  %v4125_v0 = vld [vmem:[#allocation5 + $0x5a0] ss:$16 sps:$4 sm:$0xff]   ;;  %v4128_v1 = vld [vmem:[#allocation5 + $0x5a8] ss:$16 sps:$4 sm:$0xff]  }
  0xc6   :  { %1729 = vmatprep.subr.bf16.mxu0 %v4043_v2  ;;  %1893 = vmatprep.subr.bf16.mxu1 %v4046_v3  ;;  %v4133_v2 = vld [vmem:[#allocation5 + $0x5c4] ss:$16 sps:$4 sm:$0xff]   ;;  %v4136_v3 = vld [vmem:[#allocation5 + $0x5cc] ss:$16 sps:$4 sm:$0xff]  }
  0xc9   :  { %1730 = vmatpush1.bf16.msra.mxu0 %v4041_v4  ;;  %1894 = vmatpush1.bf16.msra.mxu1 %v4044_v5  ;;  %v4131_v4 = vld [vmem:[#allocation5 + $0x5c0] ss:$16 sps:$4 sm:$0xff]   ;;  %v4134_v5 = vld [vmem:[#allocation5 + $0x5c8] ss:$16 sps:$4 sm:$0xff]  }
  0xca   :  { %1740 = vmatprep.subr.bf16.mxu0 %v4049_v6  ;;  %1904 = vmatprep.subr.bf16.mxu1 %v4052_v8  ;;  %v4139_v6 = vld [vmem:[#allocation5 + $0x5e4] ss:$16 sps:$4 sm:$0xff]   ;;  %v4137_v8 = vld [vmem:[#allocation5 + $0x5e0] ss:$16 sps:$4 sm:$0xff]  }
  0xcc   :  { %1732 = vmatmul.mubr.bf16.vlgmr.msra.gmra.mrb[0].mxu0 %v94_v11  ;;  %1896 = vmatmul.mubr.bf16.vlgmr.msra.gmra.mrb[0].mxu1 %v94_v11  ;;  %v88_v11 = vld [vmem:[#allocation2 + $0x20] sm:$0xff] }
  0xcd   :  { %1741 = vmatpush1.bf16.msra.mxu0 %v4047_v9  ;;  %1905 = vmatpush1.bf16.msra.mxu1 %v4050_v10  ;;  %v4140_v9 = vld [vmem:[#allocation5 + $0x5e8] ss:$16 sps:$4 sm:$0xff]   ;;  %v4145_v10 = vld [vmem:[#allocation5 + $0x604] ss:$16 sps:$4 sm:$0xff]  }
  0xce   :  { %1742 = vmatprep.subr.bf16.mxu0 %v4055_v12  ;;  %1906 = vmatprep.subr.bf16.mxu1 %v4058_v13  ;;  %v4148_v12 = vld [vmem:[#allocation5 + $0x60c] ss:$16 sps:$4 sm:$0xff]   ;;  %v4143_v13 = vld [vmem:[#allocation5 + $0x600] ss:$16 sps:$4 sm:$0xff]  }
  0xcf   :  { %1772 = vmatprep.mubr.bf16.mxu0 %v97_v15  ;;  %1936 = vmatprep.mubr.bf16.mxu1 %v97_v15  ;;  %v96_v15 = vpack.c.bf16 %v88_v11, %v88_v11  ;;  %v4238_v11 = vld [vmem:[#allocation5 + $0x7ec] ss:$16 sps:$4 sm:$0xff]  }
  0xd1   :  { %1743 = vmatpush1.bf16.msra.mxu0 %v4053_v16  ;;  %1907 = vmatpush1.bf16.msra.mxu1 %v4056_v17  ;;  %v91_v16 = vld [vmem:[#allocation2 + $0x38] sm:$0xff]  ;;  %v4151_v17 = vld [vmem:[#allocation5 + $0x624] ss:$16 sps:$4 sm:$0xff]  }
  0xd2   :  { %1744 = vmatprep.subr.bf16.mxu0 %v4061_v18  ;;  %1908 = vmatprep.subr.bf16.mxu1 %v4064_v19  ;;  %v4154_v18 = vld [vmem:[#allocation5 + $0x62c] ss:$16 sps:$4 sm:$0xff]   ;;  %v99_v19 = vpack.c.bf16 %v91_v16, %v91_v16 }
  0xd3   :  { %v4244_v16 = vld [vmem:[#allocation7 + $0xc] ss:$16 sps:$4 sm:$0xff]  }
  0xd5   :  { %1745 = vmatpush1.bf16.msra.mxu0 %v4059_v20  ;;  %1909 = vmatpush1.bf16.msra.mxu1 %v4062_v21  ;;  %v4149_v20 = vld [vmem:[#allocation5 + $0x620] ss:$16 sps:$4 sm:$0xff]   ;;  %v4152_v21 = vld [vmem:[#allocation5 + $0x628] ss:$16 sps:$4 sm:$0xff]  }
  0xd6   :  { %1746 = vmatprep.subr.bf16.mxu0 %v4067_v22  ;;  %1910 = vmatprep.subr.bf16.mxu1 %v4070_v23  ;;  %v4157_v22 = vld [vmem:[#allocation5 + $0x644] ss:$16 sps:$4 sm:$0xff]   ;;  %v4160_v23 = vld [vmem:[#allocation5 + $0x64c] ss:$16 sps:$4 sm:$0xff]  }
  0xd9   :  { %1747 = vmatpush1.bf16.msra.mxu0 %v4065_v24  ;;  %1911 = vmatpush1.bf16.msra.mxu1 %v4068_v25  ;;  %v4155_v24 = vld [vmem:[#allocation5 + $0x640] ss:$16 sps:$4 sm:$0xff]   ;;  %v4158_v25 = vld [vmem:[#allocation5 + $0x648] ss:$16 sps:$4 sm:$0xff]  }
  0xda   :  { %1748 = vmatprep.subr.bf16.mxu0 %v4073_v26  ;;  %1912 = vmatprep.subr.bf16.mxu1 %v4076_v27  ;;  %v4163_v26 = vld [vmem:[#allocation5 + $0x664] ss:$16 sps:$4 sm:$0xff]   ;;  %v4166_v27 = vld [vmem:[#allocation5 + $0x66c] ss:$16 sps:$4 sm:$0xff]  }
  0xdd   :  { %1749 = vmatpush1.bf16.msra.mxu0 %v4071_v28  ;;  %1913 = vmatpush1.bf16.msra.mxu1 %v4074_v29  ;;  %v4161_v28 = vld [vmem:[#allocation5 + $0x660] ss:$16 sps:$4 sm:$0xff]   ;;  %v4164_v29 = vld [vmem:[#allocation5 + $0x668] ss:$16 sps:$4 sm:$0xff]  }
  0xde   :  { %1750 = vmatprep.subr.bf16.mxu0 %v4079_v30  ;;  %1914 = vmatprep.subr.bf16.mxu1 %v4082_v31  ;;  %v4169_v30 = vld [vmem:[#allocation5 + $0x684] ss:$16 sps:$4 sm:$0xff]   ;;  %v4172_v31 = vld [vmem:[#allocation5 + $0x68c] ss:$16 sps:$4 sm:$0xff]  }
  0xe1   :  { %1751 = vmatpush1.bf16.msra.mxu0 %v4077_v32  ;;  %1915 = vmatpush1.bf16.msra.mxu1 %v4080_v33  ;;  %v4167_v32 = vld [vmem:[#allocation5 + $0x680] ss:$16 sps:$4 sm:$0xff]   ;;  %v4170_v33 = vld [vmem:[#allocation5 + $0x688] ss:$16 sps:$4 sm:$0xff]  }
  0xe2   :  { %1752 = vmatprep.subr.bf16.mxu0 %v4085_v34  ;;  %1916 = vmatprep.subr.bf16.mxu1 %v4088_v35  ;;  %v4175_v34 = vld [vmem:[#allocation5 + $0x6a4] ss:$16 sps:$4 sm:$0xff]   ;;  %v4178_v35 = vld [vmem:[#allocation5 + $0x6ac] ss:$16 sps:$4 sm:$0xff]  }
  0xe5   :  { %1753 = vmatpush1.bf16.msra.mxu0 %v4083_v36  ;;  %1917 = vmatpush1.bf16.msra.mxu1 %v4086_v37  ;;  %v4173_v36 = vld [vmem:[#allocation5 + $0x6a0] ss:$16 sps:$4 sm:$0xff]   ;;  %v4176_v37 = vld [vmem:[#allocation5 + $0x6a8] ss:$16 sps:$4 sm:$0xff]  }
  0xe6   :  { %1754 = vmatprep.subr.bf16.mxu0 %v4091_v38  ;;  %1918 = vmatprep.subr.bf16.mxu1 %v4094_v39  ;;  %v4181_v38 = vld [vmem:[#allocation5 + $0x6c4] ss:$16 sps:$4 sm:$0xff]   ;;  %v4184_v39 = vld [vmem:[#allocation5 + $0x6cc] ss:$16 sps:$4 sm:$0xff]  }
  0xe9   :  { %1755 = vmatpush1.bf16.msra.mxu0 %v4089_v40  ;;  %1919 = vmatpush1.bf16.msra.mxu1 %v4092_v41  ;;  %v4179_v40 = vld [vmem:[#allocation5 + $0x6c0] ss:$16 sps:$4 sm:$0xff]   ;;  %v4182_v41 = vld [vmem:[#allocation5 + $0x6c8] ss:$16 sps:$4 sm:$0xff]  }
  0xea   :  { %1756 = vmatprep.subr.bf16.mxu0 %v4097_v42  ;;  %1920 = vmatprep.subr.bf16.mxu1 %v4100_v43  ;;  %v4187_v42 = vld [vmem:[#allocation5 + $0x6e4] ss:$16 sps:$4 sm:$0xff]   ;;  %v4190_v43 = vld [vmem:[#allocation5 + $0x6ec] ss:$16 sps:$4 sm:$0xff]  }
  0xed   :  { %1757 = vmatpush1.bf16.msra.mxu0 %v4095_v44  ;;  %1921 = vmatpush1.bf16.msra.mxu1 %v4098_v45  ;;  %v4185_v44 = vld [vmem:[#allocation5 + $0x6e0] ss:$16 sps:$4 sm:$0xff]   ;;  %v4188_v45 = vld [vmem:[#allocation5 + $0x6e8] ss:$16 sps:$4 sm:$0xff]  }
  0xee   :  { %1758 = vmatprep.subr.bf16.mxu0 %v4103_v46  ;;  %1922 = vmatprep.subr.bf16.mxu1 %v4106_v47  ;;  %v4193_v46 = vld [vmem:[#allocation5 + $0x704] ss:$16 sps:$4 sm:$0xff]   ;;  %v4196_v47 = vld [vmem:[#allocation5 + $0x70c] ss:$16 sps:$4 sm:$0xff]  }
  0xf1   :  { %1759 = vmatpush1.bf16.msra.mxu0 %v4101_v48  ;;  %1923 = vmatpush1.bf16.msra.mxu1 %v4104_v49  ;;  %v4191_v48 = vld [vmem:[#allocation5 + $0x700] ss:$16 sps:$4 sm:$0xff]   ;;  %v4194_v49 = vld [vmem:[#allocation5 + $0x708] ss:$16 sps:$4 sm:$0xff]  }
  0xf2   :  { %1760 = vmatprep.subr.bf16.mxu0 %v4109_v50  ;;  %1924 = vmatprep.subr.bf16.mxu1 %v4112_v51  ;;  %v4199_v50 = vld [vmem:[#allocation5 + $0x724] ss:$16 sps:$4 sm:$0xff]   ;;  %v4202_v51 = vld [vmem:[#allocation5 + $0x72c] ss:$16 sps:$4 sm:$0xff]  }
  0xf5   :  { %1761 = vmatpush1.bf16.msra.mxu0 %v4107_v52  ;;  %1925 = vmatpush1.bf16.msra.mxu1 %v4110_v53  ;;  %v4197_v52 = vld [vmem:[#allocation5 + $0x720] ss:$16 sps:$4 sm:$0xff]   ;;  %v4200_v53 = vld [vmem:[#allocation5 + $0x728] ss:$16 sps:$4 sm:$0xff]  }
  0xf6   :  { %1762 = vmatprep.subr.bf16.mxu0 %v4115_v54  ;;  %1926 = vmatprep.subr.bf16.mxu1 %v4118_v55  ;;  %v4205_v54 = vld [vmem:[#allocation5 + $0x744] ss:$16 sps:$4 sm:$0xff]   ;;  %v4208_v55 = vld [vmem:[#allocation5 + $0x74c] ss:$16 sps:$4 sm:$0xff]  }
  0xf9   :  { %1763 = vmatpush1.bf16.msra.mxu0 %v4113_v56  ;;  %1927 = vmatpush1.bf16.msra.mxu1 %v4116_v57  ;;  %v4203_v56 = vld [vmem:[#allocation5 + $0x740] ss:$16 sps:$4 sm:$0xff]   ;;  %v4206_v57 = vld [vmem:[#allocation5 + $0x748] ss:$16 sps:$4 sm:$0xff]  }
  0xfa   :  { %1764 = vmatprep.subr.bf16.mxu0 %v4121_v58  ;;  %1928 = vmatprep.subr.bf16.mxu1 %v4124_v59  ;;  %v4211_v58 = vld [vmem:[#allocation5 + $0x764] ss:$16 sps:$4 sm:$0xff]   ;;  %v4214_v59 = vld [vmem:[#allocation5 + $0x76c] ss:$16 sps:$4 sm:$0xff]  }
  0xfd   :  { %1765 = vmatpush1.bf16.msra.mxu0 %v4119_v60  ;;  %1929 = vmatpush1.bf16.msra.mxu1 %v4122_v61  ;;  %v4209_v60 = vld [vmem:[#allocation5 + $0x760] ss:$16 sps:$4 sm:$0xff]   ;;  %v4212_v61 = vld [vmem:[#allocation5 + $0x768] ss:$16 sps:$4 sm:$0xff]  }
  0xfe   :  { %1766 = vmatprep.subr.bf16.mxu0 %v4127_v62  ;;  %1930 = vmatprep.subr.bf16.mxu1 %v4130_v63  ;;  %v4217_v62 = vld [vmem:[#allocation5 + $0x784] ss:$16 sps:$4 sm:$0xff]   ;;  %v4220_v63 = vld [vmem:[#allocation5 + $0x78c] ss:$16 sps:$4 sm:$0xff]  }
 0x101   :  { %1767 = vmatpush1.bf16.msra.mxu0 %v4125_v0  ;;  %1931 = vmatpush1.bf16.msra.mxu1 %v4128_v1  ;;  %v4215_v0 = vld [vmem:[#allocation5 + $0x780] ss:$16 sps:$4 sm:$0xff]   ;;  %v4218_v1 = vld [vmem:[#allocation5 + $0x788] ss:$16 sps:$4 sm:$0xff]  }
 0x102   :  { %1768 = vmatprep.subr.bf16.mxu0 %v4133_v2  ;;  %1932 = vmatprep.subr.bf16.mxu1 %v4136_v3  ;;  %v4223_v2 = vld [vmem:[#allocation5 + $0x7a4] ss:$16 sps:$4 sm:$0xff]   ;;  %v4226_v3 = vld [vmem:[#allocation5 + $0x7ac] ss:$16 sps:$4 sm:$0xff]  }
 0x105   :  { %1769 = vmatpush1.bf16.msra.mxu0 %v4131_v4  ;;  %1933 = vmatpush1.bf16.msra.mxu1 %v4134_v5  ;;  %v4221_v4 = vld [vmem:[#allocation5 + $0x7a0] ss:$16 sps:$4 sm:$0xff]   ;;  %v4224_v5 = vld [vmem:[#allocation5 + $0x7a8] ss:$16 sps:$4 sm:$0xff]  }
 0x106   :  { %1770 = vmatprep.subr.bf16.mxu0 %v4139_v6  ;;  %1934 = vmatprep.subr.bf16.mxu1 %v4142_v7  ;;  %v4229_v6 = vld [vmem:[#allocation5 + $0x7c4] ss:$16 sps:$4 sm:$0xff]   ;;  %v4232_v7 = vld [vmem:[#allocation5 + $0x7cc] ss:$16 sps:$4 sm:$0xff]  }
 0x109   :  { %1771 = vmatpush1.bf16.msra.mxu0 %v4137_v8  ;;  %1935 = vmatpush1.bf16.msra.mxu1 %v4140_v9  ;;  %v4227_v8 = vld [vmem:[#allocation5 + $0x7c0] ss:$16 sps:$4 sm:$0xff]   ;;  %v4230_v9 = vld [vmem:[#allocation5 + $0x7c8] ss:$16 sps:$4 sm:$0xff]  }
 0x10a   :  { %1781 = vmatprep.subr.bf16.mxu0 %v4145_v10  ;;  %1945 = vmatprep.subr.bf16.mxu1 %v4148_v12  ;;  %v4235_v10 = vld [vmem:[#allocation5 + $0x7e4] ss:$16 sps:$4 sm:$0xff]   ;;  %v4233_v12 = vld [vmem:[#allocation5 + $0x7e0] ss:$16 sps:$4 sm:$0xff]  }
 0x10c   :  { %1773 = vmatmul.mubr.bf16.vlgmr.msra.gmra.mrb[0].mxu0 %v96_v15  ;;  %1937 = vmatmul.mubr.bf16.vlgmr.msra.gmra.mrb[0].mxu1 %v96_v15  ;;  %v4241_v15 = vld [vmem:[#allocation7 + $0x4] ss:$16 sps:$4 sm:$0xff]  }
 0x10d   :  { %1782 = vmatpush1.bf16.msra.mxu0 %v4143_v13  ;;  %1946 = vmatpush1.bf16.msra.mxu1 %v4146_v14  ;;  %v4236_v13 = vld [vmem:[#allocation5 + $0x7e8] ss:$16 sps:$4 sm:$0xff]   ;;  %v90_v14 = vld [vmem:[#allocation2 + $0x30] sm:$0xff] }
 0x10e   :  { %1783 = vmatprep.subr.bf16.mxu0 %v4151_v17  ;;  %1947 = vmatprep.subr.bf16.mxu1 %v4154_v18  ;;  %v4239_v17 = vld [vmem:[#allocation7] ss:$16 sps:$4 sm:$0xff]   ;;  %v4242_v18 = vld [vmem:[#allocation7 + $0x8] ss:$16 sps:$4 sm:$0xff]  }
 0x10f   :  { %1813 = vmatprep.mubr.bf16.mxu0 %v99_v19  ;;  %1977 = vmatprep.mubr.bf16.mxu1 %v99_v19  ;;  %v98_v19 = vpack.c.bf16 %v90_v14, %v90_v14  ;;  %v4329_v14 = vld [vmem:[#allocation7 + $0x1e0] ss:$16 sps:$4 sm:$0xff]  }
 0x111   :  { %1784 = vmatpush1.bf16.msra.mxu0 %v4149_v20  ;;  %1948 = vmatpush1.bf16.msra.mxu1 %v4152_v21  ;;  %v4247_v20 = vld [vmem:[#allocation7 + $0x24] ss:$16 sps:$4 sm:$0xff]   ;;  %v4250_v21 = vld [vmem:[#allocation7 + $0x2c] ss:$16 sps:$4 sm:$0xff]  }
 0x112   :  { %1785 = vmatprep.subr.bf16.mxu0 %v4157_v22  ;;  %1949 = vmatprep.subr.bf16.mxu1 %v4160_v23  ;;  %v4245_v22 = vld [vmem:[#allocation7 + $0x20] ss:$16 sps:$4 sm:$0xff]   ;;  %v4248_v23 = vld [vmem:[#allocation7 + $0x28] ss:$16 sps:$4 sm:$0xff]  }
 0x115   :  { %1786 = vmatpush1.bf16.msra.mxu0 %v4155_v24  ;;  %1950 = vmatpush1.bf16.msra.mxu1 %v4158_v25  ;;  %v4253_v24 = vld [vmem:[#allocation7 + $0x44] ss:$16 sps:$4 sm:$0xff]   ;;  %v4256_v25 = vld [vmem:[#allocation7 + $0x4c] ss:$16 sps:$4 sm:$0xff]  }
 0x116   :  { %1787 = vmatprep.subr.bf16.mxu0 %v4163_v26  ;;  %1951 = vmatprep.subr.bf16.mxu1 %v4166_v27  ;;  %v4251_v26 = vld [vmem:[#allocation7 + $0x40] ss:$16 sps:$4 sm:$0xff]   ;;  %v4254_v27 = vld [vmem:[#allocation7 + $0x48] ss:$16 sps:$4 sm:$0xff]  }
 0x119   :  { %1788 = vmatpush1.bf16.msra.mxu0 %v4161_v28  ;;  %1952 = vmatpush1.bf16.msra.mxu1 %v4164_v29  ;;  %v4259_v28 = vld [vmem:[#allocation7 + $0x64] ss:$16 sps:$4 sm:$0xff]   ;;  %v4262_v29 = vld [vmem:[#allocation7 + $0x6c] ss:$16 sps:$4 sm:$0xff]  }
 0x11a   :  { %1789 = vmatprep.subr.bf16.mxu0 %v4169_v30  ;;  %1953 = vmatprep.subr.bf16.mxu1 %v4172_v31  ;;  %v4257_v30 = vld [vmem:[#allocation7 + $0x60] ss:$16 sps:$4 sm:$0xff]   ;;  %v4260_v31 = vld [vmem:[#allocation7 + $0x68] ss:$16 sps:$4 sm:$0xff]  }
 0x11d   :  { %1790 = vmatpush1.bf16.msra.mxu0 %v4167_v32  ;;  %1954 = vmatpush1.bf16.msra.mxu1 %v4170_v33  ;;  %v4265_v32 = vld [vmem:[#allocation7 + $0x84] ss:$16 sps:$4 sm:$0xff]   ;;  %v4268_v33 = vld [vmem:[#allocation7 + $0x8c] ss:$16 sps:$4 sm:$0xff]  }
 0x11e   :  { %1791 = vmatprep.subr.bf16.mxu0 %v4175_v34  ;;  %1955 = vmatprep.subr.bf16.mxu1 %v4178_v35  ;;  %v4263_v34 = vld [vmem:[#allocation7 + $0x80] ss:$16 sps:$4 sm:$0xff]   ;;  %v4266_v35 = vld [vmem:[#allocation7 + $0x88] ss:$16 sps:$4 sm:$0xff]  }
 0x121   :  { %1792 = vmatpush1.bf16.msra.mxu0 %v4173_v36  ;;  %1956 = vmatpush1.bf16.msra.mxu1 %v4176_v37  ;;  %v4271_v36 = vld [vmem:[#allocation7 + $0xa4] ss:$16 sps:$4 sm:$0xff]   ;;  %v4274_v37 = vld [vmem:[#allocation7 + $0xac] ss:$16 sps:$4 sm:$0xff]  }
 0x122   :  { %1793 = vmatprep.subr.bf16.mxu0 %v4181_v38  ;;  %1957 = vmatprep.subr.bf16.mxu1 %v4184_v39  ;;  %v4269_v38 = vld [vmem:[#allocation7 + $0xa0] ss:$16 sps:$4 sm:$0xff]   ;;  %v4272_v39 = vld [vmem:[#allocation7 + $0xa8] ss:$16 sps:$4 sm:$0xff]  }
 0x125   :  { %1794 = vmatpush1.bf16.msra.mxu0 %v4179_v40  ;;  %1958 = vmatpush1.bf16.msra.mxu1 %v4182_v41  ;;  %v4277_v40 = vld [vmem:[#allocation7 + $0xc4] ss:$16 sps:$4 sm:$0xff]   ;;  %v4280_v41 = vld [vmem:[#allocation7 + $0xcc] ss:$16 sps:$4 sm:$0xff]  }
 0x126   :  { %1795 = vmatprep.subr.bf16.mxu0 %v4187_v42  ;;  %1959 = vmatprep.subr.bf16.mxu1 %v4190_v43  ;;  %v4275_v42 = vld [vmem:[#allocation7 + $0xc0] ss:$16 sps:$4 sm:$0xff]   ;;  %v4278_v43 = vld [vmem:[#allocation7 + $0xc8] ss:$16 sps:$4 sm:$0xff]  }
 0x129   :  { %1796 = vmatpush1.bf16.msra.mxu0 %v4185_v44  ;;  %1960 = vmatpush1.bf16.msra.mxu1 %v4188_v45  ;;  %v4283_v44 = vld [vmem:[#allocation7 + $0xe4] ss:$16 sps:$4 sm:$0xff]   ;;  %v4286_v45 = vld [vmem:[#allocation7 + $0xec] ss:$16 sps:$4 sm:$0xff]  }
 0x12a   :  { %1797 = vmatprep.subr.bf16.mxu0 %v4193_v46  ;;  %1961 = vmatprep.subr.bf16.mxu1 %v4196_v47  ;;  %v4281_v46 = vld [vmem:[#allocation7 + $0xe0] ss:$16 sps:$4 sm:$0xff]   ;;  %v4284_v47 = vld [vmem:[#allocation7 + $0xe8] ss:$16 sps:$4 sm:$0xff]  }
 0x12d   :  { %1798 = vmatpush1.bf16.msra.mxu0 %v4191_v48  ;;  %1962 = vmatpush1.bf16.msra.mxu1 %v4194_v49  ;;  %v4289_v48 = vld [vmem:[#allocation7 + $0x104] ss:$16 sps:$4 sm:$0xff]   ;;  %v4292_v49 = vld [vmem:[#allocation7 + $0x10c] ss:$16 sps:$4 sm:$0xff]  }
 0x12e   :  { %1799 = vmatprep.subr.bf16.mxu0 %v4199_v50  ;;  %1963 = vmatprep.subr.bf16.mxu1 %v4202_v51  ;;  %v4287_v50 = vld [vmem:[#allocation7 + $0x100] ss:$16 sps:$4 sm:$0xff]   ;;  %v4290_v51 = vld [vmem:[#allocation7 + $0x108] ss:$16 sps:$4 sm:$0xff]  }
 0x131   :  { %1800 = vmatpush1.bf16.msra.mxu0 %v4197_v52  ;;  %1964 = vmatpush1.bf16.msra.mxu1 %v4200_v53  ;;  %v4295_v52 = vld [vmem:[#allocation7 + $0x124] ss:$16 sps:$4 sm:$0xff]   ;;  %v4298_v53 = vld [vmem:[#allocation7 + $0x12c] ss:$16 sps:$4 sm:$0xff]  }
 0x132   :  { %1801 = vmatprep.subr.bf16.mxu0 %v4205_v54  ;;  %1965 = vmatprep.subr.bf16.mxu1 %v4208_v55  ;;  %v4293_v54 = vld [vmem:[#allocation7 + $0x120] ss:$16 sps:$4 sm:$0xff]   ;;  %v4296_v55 = vld [vmem:[#allocation7 + $0x128] ss:$16 sps:$4 sm:$0xff]  }
 0x135   :  { %1802 = vmatpush1.bf16.msra.mxu0 %v4203_v56  ;;  %1966 = vmatpush1.bf16.msra.mxu1 %v4206_v57  ;;  %v4301_v56 = vld [vmem:[#allocation7 + $0x144] ss:$16 sps:$4 sm:$0xff]   ;;  %v4304_v57 = vld [vmem:[#allocation7 + $0x14c] ss:$16 sps:$4 sm:$0xff]  }
 0x136   :  { %1803 = vmatprep.subr.bf16.mxu0 %v4211_v58  ;;  %1967 = vmatprep.subr.bf16.mxu1 %v4214_v59  ;;  %v4299_v58 = vld [vmem:[#allocation7 + $0x140] ss:$16 sps:$4 sm:$0xff]   ;;  %v4302_v59 = vld [vmem:[#allocation7 + $0x148] ss:$16 sps:$4 sm:$0xff]  }
 0x139   :  { %1804 = vmatpush1.bf16.msra.mxu0 %v4209_v60  ;;  %1968 = vmatpush1.bf16.msra.mxu1 %v4212_v61  ;;  %v4307_v60 = vld [vmem:[#allocation7 + $0x164] ss:$16 sps:$4 sm:$0xff]   ;;  %v4310_v61 = vld [vmem:[#allocation7 + $0x16c] ss:$16 sps:$4 sm:$0xff]  }
 0x13a   :  { %1805 = vmatprep.subr.bf16.mxu0 %v4217_v62  ;;  %1969 = vmatprep.subr.bf16.mxu1 %v4220_v63  ;;  %v4305_v62 = vld [vmem:[#allocation7 + $0x160] ss:$16 sps:$4 sm:$0xff]   ;;  %v4308_v63 = vld [vmem:[#allocation7 + $0x168] ss:$16 sps:$4 sm:$0xff]  }
 0x13d   :  { %1806 = vmatpush1.bf16.msra.mxu0 %v4215_v0  ;;  %1970 = vmatpush1.bf16.msra.mxu1 %v4218_v1  ;;  %v4313_v0 = vld [vmem:[#allocation7 + $0x184] ss:$16 sps:$4 sm:$0xff]   ;;  %v4316_v1 = vld [vmem:[#allocation7 + $0x18c] ss:$16 sps:$4 sm:$0xff]  }
 0x13e   :  { %1807 = vmatprep.subr.bf16.mxu0 %v4223_v2  ;;  %1971 = vmatprep.subr.bf16.mxu1 %v4226_v3  ;;  %v4311_v2 = vld [vmem:[#allocation7 + $0x180] ss:$16 sps:$4 sm:$0xff]   ;;  %v4314_v3 = vld [vmem:[#allocation7 + $0x188] ss:$16 sps:$4 sm:$0xff]  }
 0x141   :  { %1808 = vmatpush1.bf16.msra.mxu0 %v4221_v4  ;;  %1972 = vmatpush1.bf16.msra.mxu1 %v4224_v5  ;;  %v4319_v4 = vld [vmem:[#allocation7 + $0x1a4] ss:$16 sps:$4 sm:$0xff]   ;;  %v4322_v5 = vld [vmem:[#allocation7 + $0x1ac] ss:$16 sps:$4 sm:$0xff]  }
 0x142   :  { %1809 = vmatprep.subr.bf16.mxu0 %v4229_v6  ;;  %1973 = vmatprep.subr.bf16.mxu1 %v4232_v7  ;;  %v4317_v6 = vld [vmem:[#allocation7 + $0x1a0] ss:$16 sps:$4 sm:$0xff]   ;;  %v4320_v7 = vld [vmem:[#allocation7 + $0x1a8] ss:$16 sps:$4 sm:$0xff]  }
 0x145   :  { %1810 = vmatpush1.bf16.msra.mxu0 %v4227_v8  ;;  %1974 = vmatpush1.bf16.msra.mxu1 %v4230_v9  ;;  %v4325_v8 = vld [vmem:[#allocation7 + $0x1c4] ss:$16 sps:$4 sm:$0xff]   ;;  %v4328_v9 = vld [vmem:[#allocation7 + $0x1cc] ss:$16 sps:$4 sm:$0xff]  }
 0x146   :  { %1811 = vmatprep.subr.bf16.mxu0 %v4235_v10  ;;  %1975 = vmatprep.subr.bf16.mxu1 %v4238_v11  ;;  %v4323_v10 = vld [vmem:[#allocation7 + $0x1c0] ss:$16 sps:$4 sm:$0xff]   ;;  %v4326_v11 = vld [vmem:[#allocation7 + $0x1c8] ss:$16 sps:$4 sm:$0xff]  }
 0x149   :  { %1812 = vmatpush1.bf16.msra.mxu0 %v4233_v12  ;;  %1976 = vmatpush1.bf16.msra.mxu1 %v4236_v13  ;;  %v4331_v12 = vld [vmem:[#allocation7 + $0x1e4] ss:$16 sps:$4 sm:$0xff]   ;;  %v4334_v13 = vld [vmem:[#allocation7 + $0x1ec] ss:$16 sps:$4 sm:$0xff]  }
 0x14a   :  { %2780 = vmatprep.subr.bf16.mxu0 %v4241_v15  ;;  %2862 = vmatprep.subr.bf16.mxu1 %v4244_v16  ;;  %v4332_v15 = vld [vmem:[#allocation7 + $0x1e8] ss:$16 sps:$4 sm:$0xff]   ;;  %v4337_v16 = vld [vmem:[#allocation7 + $0x204] ss:$16 sps:$4 sm:$0xff]  }
 0x14c   :  { %1814 = vmatmul.mubr.bf16.vlgmr.msra.gmra.mrb[0].mxu0 %v98_v19  ;;  %1978 = vmatmul.mubr.bf16.vlgmr.msra.gmra.mrb[0].mxu1 %v98_v19 }
 0x14d   :  { %2781 = vmatpush1.bf16.msra.mxu0 %v4239_v17  ;;  %2863 = vmatpush1.bf16.msra.mxu1 %v4242_v18  ;;  %v4340_v17 = vld [vmem:[#allocation7 + $0x20c] ss:$16 sps:$4 sm:$0xff]   ;;  %v358_v18 = vlaneseq }
 0x14e   :  { %2782 = vmatprep.subr.bf16.mxu0 %v4247_v20  ;;  %2864 = vmatprep.subr.bf16.mxu1 %v4250_v21  ;;  %v4724_v21 = vld [vmem:[%s4804_s2] sm:$0xf] }
 0x14f   :  { %v4718_v19 = vshrl.u32 %v358_v18, 7  ;;  %v4398_v18 = vld [vmem:[#allocation7 + $0x348] ss:$16 sps:$4 sm:$0xff]  }
 0x151   :  { %2783 = vmatpush1.bf16.msra.mxu0 %v4245_v22  ;;  %2865 = vmatpush1.bf16.msra.mxu1 %v4248_v23  ;;  %v360_v20 = vsub.s32 0, %v4718_v19  ;;  %v364_v22 = vsub.s32 1, %v4718_v19  ;;  %v372_v23 = vsub.s32 3, %v4718_v19 }
 0x152   :  { %2784 = vmatprep.subr.bf16.mxu0 %v4253_v24  ;;  %2866 = vmatprep.subr.bf16.mxu1 %v4256_v25 }
 0x153   :  { %v361_v24 = vrot.slane %v4724_v21, %v360_v20  ;;  %v365_v25 = vrot.slane %v4724_v21, %v364_v22 }
 0x155   :  { %2785 = vmatpush1.bf16.msra.mxu0 %v4251_v26  ;;  %2867 = vmatpush1.bf16.msra.mxu1 %v4254_v27  ;;  %v373_v26 = vrot.slane %v4724_v21, %v372_v23 }
 0x156   :  { %2786 = vmatprep.subr.bf16.mxu0 %v4259_v28  ;;  %2868 = vmatprep.subr.bf16.mxu1 %v4262_v29 }
 0x159   :  { %2787 = vmatpush1.bf16.msra.mxu0 %v4257_v30  ;;  %2869 = vmatpush1.bf16.msra.mxu1 %v4260_v31 }
 0x15a   :  { %2788 = vmatprep.subr.bf16.mxu0 %v4265_v32  ;;  %2870 = vmatprep.subr.bf16.mxu1 %v4268_v33 }
 0x15d   :  { %2789 = vmatpush1.bf16.msra.mxu0 %v4263_v34  ;;  %2871 = vmatpush1.bf16.msra.mxu1 %v4266_v35 }
 0x15e   :  { %2790 = vmatprep.subr.bf16.mxu0 %v4271_v36  ;;  %2872 = vmatprep.subr.bf16.mxu1 %v4274_v37 }
 0x161   :  { %2791 = vmatpush1.bf16.msra.mxu0 %v4269_v38  ;;  %2873 = vmatpush1.bf16.msra.mxu1 %v4272_v39  ;;  %v4335_v39 = vld [vmem:[#allocation7 + $0x200] ss:$16 sps:$4 sm:$0xff]  }
 0x162   :  { %2792 = vmatprep.subr.bf16.mxu0 %v4277_v40  ;;  %2874 = vmatprep.subr.bf16.mxu1 %v4280_v41  ;;  %v4338_v40 = vld [vmem:[#allocation7 + $0x208] ss:$16 sps:$4 sm:$0xff]  }
 0x165   :  { %2793 = vmatpush1.bf16.msra.mxu0 %v4275_v42  ;;  %2875 = vmatpush1.bf16.msra.mxu1 %v4278_v43  ;;  %v4343_v42 = vld [vmem:[#allocation7 + $0x224] ss:$16 sps:$4 sm:$0xff]   ;;  %v4346_v43 = vld [vmem:[#allocation7 + $0x22c] ss:$16 sps:$4 sm:$0xff]  }
 0x166   :  { %2794 = vmatprep.subr.bf16.mxu0 %v4283_v44  ;;  %2876 = vmatprep.subr.bf16.mxu1 %v4286_v45  ;;  %v4341_v45 = vld [vmem:[#allocation7 + $0x220] ss:$16 sps:$4 sm:$0xff]  }
 0x169   :  { %2795 = vmatpush1.bf16.msra.mxu0 %v4281_v46  ;;  %2877 = vmatpush1.bf16.msra.mxu1 %v4284_v47  ;;  %v4344_v46 = vld [vmem:[#allocation7 + $0x228] ss:$16 sps:$4 sm:$0xff]   ;;  %v4349_v47 = vld [vmem:[#allocation7 + $0x244] ss:$16 sps:$4 sm:$0xff]  }
 0x16a   :  { %2796 = vmatprep.subr.bf16.mxu0 %v4289_v48  ;;  %2878 = vmatprep.subr.bf16.mxu1 %v4292_v49  ;;  %v4352_v48 = vld [vmem:[#allocation7 + $0x24c] ss:$16 sps:$4 sm:$0xff]   ;;  %v4347_v49 = vld [vmem:[#allocation7 + $0x240] ss:$16 sps:$4 sm:$0xff]  }
 0x16d   :  { %2797 = vmatpush1.bf16.msra.mxu0 %v4287_v50  ;;  %2879 = vmatpush1.bf16.msra.mxu1 %v4290_v51  ;;  %v4350_v50 = vld [vmem:[#allocation7 + $0x248] ss:$16 sps:$4 sm:$0xff]   ;;  %v4355_v51 = vld [vmem:[#allocation7 + $0x264] ss:$16 sps:$4 sm:$0xff]  }
 0x16e   :  { %2798 = vmatprep.subr.bf16.mxu0 %v4295_v52  ;;  %2880 = vmatprep.subr.bf16.mxu1 %v4298_v53  ;;  %v4358_v52 = vld [vmem:[#allocation7 + $0x26c] ss:$16 sps:$4 sm:$0xff]   ;;  %v4353_v53 = vld [vmem:[#allocation7 + $0x260] ss:$16 sps:$4 sm:$0xff]  }
 0x171   :  { %2799 = vmatpush1.bf16.msra.mxu0 %v4293_v54  ;;  %2881 = vmatpush1.bf16.msra.mxu1 %v4296_v55  ;;  %v4356_v54 = vld [vmem:[#allocation7 + $0x268] ss:$16 sps:$4 sm:$0xff]   ;;  %v4361_v55 = vld [vmem:[#allocation7 + $0x284] ss:$16 sps:$4 sm:$0xff]  }
 0x172   :  { %2800 = vmatprep.subr.bf16.mxu0 %v4301_v56  ;;  %2882 = vmatprep.subr.bf16.mxu1 %v4304_v57  ;;  %v4364_v56 = vld [vmem:[#allocation7 + $0x28c] ss:$16 sps:$4 sm:$0xff]   ;;  %v4359_v57 = vld [vmem:[#allocation7 + $0x280] ss:$16 sps:$4 sm:$0xff]  }
 0x175   :  { %2801 = vmatpush1.bf16.msra.mxu0 %v4299_v58  ;;  %2883 = vmatpush1.bf16.msra.mxu1 %v4302_v59  ;;  %v4362_v58 = vld [vmem:[#allocation7 + $0x288] ss:$16 sps:$4 sm:$0xff]   ;;  %v4367_v59 = vld [vmem:[#allocation7 + $0x2a4] ss:$16 sps:$4 sm:$0xff]  }
 0x176   :  { %2802 = vmatprep.subr.bf16.mxu0 %v4307_v60  ;;  %2884 = vmatprep.subr.bf16.mxu1 %v4310_v61  ;;  %v4370_v60 = vld [vmem:[#allocation7 + $0x2ac] ss:$16 sps:$4 sm:$0xff]   ;;  %v4365_v61 = vld [vmem:[#allocation7 + $0x2a0] ss:$16 sps:$4 sm:$0xff]  }
 0x179   :  { %2803 = vmatpush1.bf16.msra.mxu0 %v4305_v62  ;;  %2885 = vmatpush1.bf16.msra.mxu1 %v4308_v63  ;;  %v4368_v62 = vld [vmem:[#allocation7 + $0x2a8] ss:$16 sps:$4 sm:$0xff]   ;;  %v4373_v63 = vld [vmem:[#allocation7 + $0x2c4] ss:$16 sps:$4 sm:$0xff]  }
 0x17a   :  { %2804 = vmatprep.subr.bf16.mxu0 %v4313_v0  ;;  %2886 = vmatprep.subr.bf16.mxu1 %v4316_v1  ;;  %v4376_v0 = vld [vmem:[#allocation7 + $0x2cc] ss:$16 sps:$4 sm:$0xff]   ;;  %v4371_v1 = vld [vmem:[#allocation7 + $0x2c0] ss:$16 sps:$4 sm:$0xff]  }
 0x17d   :  { %2805 = vmatpush1.bf16.msra.mxu0 %v4311_v2  ;;  %2887 = vmatpush1.bf16.msra.mxu1 %v4314_v3  ;;  %v4374_v2 = vld [vmem:[#allocation7 + $0x2c8] ss:$16 sps:$4 sm:$0xff]   ;;  %v4379_v3 = vld [vmem:[#allocation7 + $0x2e4] ss:$16 sps:$4 sm:$0xff]  }
 0x17e   :  { %2806 = vmatprep.subr.bf16.mxu0 %v4319_v4  ;;  %2888 = vmatprep.subr.bf16.mxu1 %v4322_v5  ;;  %v4382_v4 = vld [vmem:[#allocation7 + $0x2ec] ss:$16 sps:$4 sm:$0xff]   ;;  %v4377_v5 = vld [vmem:[#allocation7 + $0x2e0] ss:$16 sps:$4 sm:$0xff]  }
 0x181   :  { %2807 = vmatpush1.bf16.msra.mxu0 %v4317_v6  ;;  %2889 = vmatpush1.bf16.msra.mxu1 %v4320_v7  ;;  %v4380_v6 = vld [vmem:[#allocation7 + $0x2e8] ss:$16 sps:$4 sm:$0xff]   ;;  %v4385_v7 = vld [vmem:[#allocation7 + $0x304] ss:$16 sps:$4 sm:$0xff]  }
 0x182   :  { %2808 = vmatprep.subr.bf16.mxu0 %v4325_v8  ;;  %2890 = vmatprep.subr.bf16.mxu1 %v4328_v9  ;;  %v4388_v8 = vld [vmem:[#allocation7 + $0x30c] ss:$16 sps:$4 sm:$0xff]   ;;  %v4383_v9 = vld [vmem:[#allocation7 + $0x300] ss:$16 sps:$4 sm:$0xff]  }
 0x185   :  { %2809 = vmatpush1.bf16.msra.mxu0 %v4323_v10  ;;  %2891 = vmatpush1.bf16.msra.mxu1 %v4326_v11  ;;  %v4386_v10 = vld [vmem:[#allocation7 + $0x308] ss:$16 sps:$4 sm:$0xff]   ;;  %v4391_v11 = vld [vmem:[#allocation7 + $0x324] ss:$16 sps:$4 sm:$0xff]  }
 0x186   :  { %2810 = vmatprep.subr.bf16.mxu0 %v4331_v12  ;;  %2892 = vmatprep.subr.bf16.mxu1 %v4334_v13  ;;  %v4394_v12 = vld [vmem:[#allocation7 + $0x32c] ss:$16 sps:$4 sm:$0xff]   ;;  %v4389_v13 = vld [vmem:[#allocation7 + $0x320] ss:$16 sps:$4 sm:$0xff]  }
 0x189   :  { %2811 = vmatpush1.bf16.msra.mxu0 %v4329_v14  ;;  %2893 = vmatpush1.bf16.msra.mxu1 %v4332_v15  ;;  %v4392_v14 = vld [vmem:[#allocation7 + $0x328] ss:$16 sps:$4 sm:$0xff]   ;;  %v4397_v15 = vld [vmem:[#allocation7 + $0x344] ss:$16 sps:$4 sm:$0xff]  }
 0x18a   :  { %2821 = vmatprep.subr.bf16.mxu0 %v4337_v16  ;;  %2903 = vmatprep.subr.bf16.mxu1 %v4340_v17  ;;  %v4400_v16 = vld [vmem:[#allocation7 + $0x34c] ss:$16 sps:$4 sm:$0xff]   ;;  %v4395_v17 = vld [vmem:[#allocation7 + $0x340] ss:$16 sps:$4 sm:$0xff]  }
 0x21f   :  { %v1815_v27 = vpop.f32.mrb[0].mxu0  ;;  %v4737_v28 = vpop.f32.mrb[0].mxu1 }
 0x220   :  { %v3805_v29 = vadd.f32 %v1815_v27, %v361_v24  ;;  %v1817_v30 = vpop.f32.mrb[1].mxu0  ;;  %v1981_v31 = vpop.f32.mrb[1].mxu1  ;;  %v4403_v24 = vld [vmem:[#allocation7 + $0x364] ss:$16 sps:$4 sm:$0xff]   ;;  %v4404_v27 = vld [vmem:[#allocation7 + $0x368] ss:$16 sps:$4 sm:$0xff]  }
 0x221   :  { %v3806_v32 = vadd.f32 %v1817_v30, %v365_v25  ;;  %v1819_v33 = vpop.f32.mrb[2].mxu0  ;;  %v1983_v34 = vpop.f32.mrb[2].mxu1  ;;  %v3808_v35 = vadd.f32 %v1981_v31, %v373_v26  ;;  %v4406_v25 = vld [vmem:[#allocation7 + $0x36c] ss:$16 sps:$4 sm:$0xff]   ;;  %v4401_v26 = vld [vmem:[#allocation7 + $0x360] ss:$16 sps:$4 sm:$0xff]  }
 0x222   :  { %v1820_v36 = vpop.f32.mrb[3].mxu0  ;;  %v1984_v37 = vpop.f32.mrb[3].mxu1  ;;  %v4741_v41 = vpack.c.bf16 %v3805_v29, %v3805_v29  ;;  %v4409_v29 = vld [vmem:[#allocation7 + $0x384] ss:$16 sps:$4 sm:$0xff]   ;;  %v4412_v30 = vld [vmem:[#allocation7 + $0x38c] ss:$16 sps:$4 sm:$0xff]  }
 0x223   :  { %v4739_v38 = vpack.c.bf16 %v3806_v32, %v3806_v32  ;;  %v4745_v44 = vpack.c.bf16 %v3808_v35, %v3808_v35  ;;  %v4407_v31 = vld [vmem:[#allocation7 + $0x380] ss:$16 sps:$4 sm:$0xff]   ;;  %v4410_v32 = vld [vmem:[#allocation7 + $0x388] ss:$16 sps:$4 sm:$0xff]   ;;  %v4415_v33 = vld [vmem:[#allocation7 + $0x3a4] ss:$16 sps:$4 sm:$0xff]  }
 0x224   :  { %v4418_v34 = vld [vmem:[#allocation7 + $0x3ac] ss:$16 sps:$4 sm:$0xff]   ;;  %v4413_v35 = vld [vmem:[#allocation7 + $0x3a0] ss:$16 sps:$4 sm:$0xff]   ;;  %v4416_v36 = vld [vmem:[#allocation7 + $0x3a8] ss:$16 sps:$4 sm:$0xff]  }
 0x225   :  { %2812 = vmatprep.mubr.bf16.mxu0 %v4739_v38  ;;  %2894 = vmatprep.mubr.bf16.mxu1 %v4739_v38  ;;  %v368_v37 = vsub.s32 2, %v4718_v19 }
 0x226   :  { %2813 = vmatmul.mubr.bf16.vlgmr.msra.gmra.mrb[4].mxu0 %v4741_v41  ;;  %2895 = vmatmul.mubr.bf16.vlgmr.msra.gmra.mrb[4].mxu1 %v4741_v41 }
 0x227   :  { %2822 = vmatpush1.bf16.msra.mxu0 %v4335_v39  ;;  %2904 = vmatpush1.bf16.msra.mxu1 %v4338_v40  ;;  %v4421_v39 = vld [vmem:[#allocation7 + $0x3c4] ss:$16 sps:$4 sm:$0xff]   ;;  %v4424_v40 = vld [vmem:[#allocation7 + $0x3cc] ss:$16 sps:$4 sm:$0xff]  }
 0x228   :  { %2853 = vmatprep.mubr.bf16.mxu0 %v4745_v44  ;;  %2935 = vmatprep.mubr.bf16.mxu1 %v4745_v44 }
 0x229   :  { %2823 = vmatprep.subr.bf16.mxu0 %v4343_v42  ;;  %2905 = vmatprep.subr.bf16.mxu1 %v4346_v43  ;;  %v4419_v42 = vld [vmem:[#allocation7 + $0x3c0] ss:$16 sps:$4 sm:$0xff]   ;;  %v4422_v43 = vld [vmem:[#allocation7 + $0x3c8] ss:$16 sps:$4 sm:$0xff]  }
 0x22b   :  { %2824 = vmatpush1.bf16.msra.mxu0 %v4341_v45  ;;  %2906 = vmatpush1.bf16.msra.mxu1 %v4344_v46  ;;  %v369_v45 = vrot.slane %v4724_v21, %v368_v37  ;;  %v4427_v46 = vld [vmem:[#allocation7 + $0x3e4] ss:$16 sps:$4 sm:$0xff]  }
 0x22c   :  { %2825 = vmatprep.subr.bf16.mxu0 %v4349_v47  ;;  %2907 = vmatprep.subr.bf16.mxu1 %v4352_v48  ;;  %v4430_v47 = vld [vmem:[#allocation7 + $0x3ec] ss:$16 sps:$4 sm:$0xff]   ;;  %v4425_v48 = vld [vmem:[#allocation7 + $0x3e0] ss:$16 sps:$4 sm:$0xff]  }
 0x22d   :  { %v4434_v21 = vld [vmem:[#allocation8 + $0x80] sm:$0xff]  }
 0x22f   :  { %2826 = vmatpush1.bf16.msra.mxu0 %v4347_v49  ;;  %2908 = vmatpush1.bf16.msra.mxu1 %v4350_v50  ;;  %v4428_v49 = vld [vmem:[#allocation7 + $0x3e8] ss:$16 sps:$4 sm:$0xff]   ;;  %v3807_v50 = vadd.f32 %v4737_v28, %v369_v45 }
 0x230   :  { %2827 = vmatprep.subr.bf16.mxu0 %v4355_v51  ;;  %2909 = vmatprep.subr.bf16.mxu1 %v4358_v52  ;;  %v4431_v51 = vld [vmem:[#allocation8 + $0x40] sm:$0xff]   ;;  %v4437_v28 = vld [vmem:[#allocation8 + $0x8] sm:$0xff]  }
 0x231   :  { %v4432_v52 = vld [vmem:[#allocation8 + $0xc0] sm:$0xff]  }
 0x233   :  { %2828 = vmatpush1.bf16.msra.mxu0 %v4353_v53  ;;  %2910 = vmatpush1.bf16.msra.mxu1 %v4356_v54  ;;  %v4433_v53 = vld [vmem:[#allocation8] sm:$0xff]   ;;  %v4756_v54 = vpack.c.bf16 %v3807_v50, %v3807_v50 }
 0x234   :  { %2829 = vmatprep.subr.bf16.mxu0 %v4361_v55  ;;  %2911 = vmatprep.subr.bf16.mxu1 %v4364_v56  ;;  %v4435_v55 = vld [vmem:[#allocation8 + $0x48] sm:$0xff]  }
 0x235   :  { %v4436_v56 = vld [vmem:[#allocation8 + $0xc8] sm:$0xff]  }
 0x237   :  { %2830 = vmatpush1.bf16.msra.mxu0 %v4359_v57  ;;  %2912 = vmatpush1.bf16.msra.mxu1 %v4362_v58  ;;  %v4438_v57 = vld [vmem:[#allocation8 + $0x88] sm:$0xff]   ;;  %v4439_v58 = vld [vmem:[#allocation8 + $0x50] sm:$0xff]  }
 0x238   :  { %2831 = vmatprep.subr.bf16.mxu0 %v4367_v59  ;;  %2913 = vmatprep.subr.bf16.mxu1 %v4370_v60  ;;  %v4440_v59 = vld [vmem:[#allocation8 + $0xd0] sm:$0xff]  }
 0x239   :  { %v4441_v60 = vld [vmem:[#allocation8 + $0x10] sm:$0xff]  }
 0x23b   :  { %2832 = vmatpush1.bf16.msra.mxu0 %v4365_v61  ;;  %2914 = vmatpush1.bf16.msra.mxu1 %v4368_v62  ;;  %v4442_v61 = vld [vmem:[#allocation8 + $0x90] sm:$0xff]   ;;  %v4443_v62 = vld [vmem:[#allocation8 + $0x58] sm:$0xff]  }
 0x23c   :  { %2833 = vmatprep.subr.bf16.mxu0 %v4373_v63  ;;  %2915 = vmatprep.subr.bf16.mxu1 %v4376_v0  ;;  %v4444_v63 = vld [vmem:[#allocation8 + $0xd8] sm:$0xff]  }
 0x23d   :  { %v4445_v0 = vld [vmem:[#allocation8 + $0x18] sm:$0xff]  }
 0x23f   :  { %2834 = vmatpush1.bf16.msra.mxu0 %v4371_v1  ;;  %2916 = vmatpush1.bf16.msra.mxu1 %v4374_v2  ;;  %v4447_v1 = vld [vmem:[#allocation8 + $0x60] sm:$0xff]  }
 0x240   :  { %2835 = vmatprep.subr.bf16.mxu0 %v4379_v3  ;;  %2917 = vmatprep.subr.bf16.mxu1 %v4382_v4  ;;  %v4449_v2 = vld [vmem:[#allocation8 + $0x20] sm:$0xff]   ;;  %v4451_v4 = vld [vmem:[#allocation8 + $0x68] sm:$0xff]  }
 0x241   :  { %v4450_v3 = vld [vmem:[#allocation8 + $0xa0] sm:$0xff]  }
 0x243   :  { %2836 = vmatpush1.bf16.msra.mxu0 %v4377_v5  ;;  %2918 = vmatpush1.bf16.msra.mxu1 %v4380_v6  ;;  %v4452_v5 = vld [vmem:[#allocation8 + $0xe8] sm:$0xff]  }
 0x244   :  { %2837 = vmatprep.subr.bf16.mxu0 %v4385_v7  ;;  %2919 = vmatprep.subr.bf16.mxu1 %v4388_v8  ;;  %v4453_v6 = vld [vmem:[#allocation8 + $0x28] sm:$0xff]   ;;  %v4455_v8 = vld [vmem:[#allocation8 + $0x70] sm:$0xff]  }
 0x245   :  { %v4454_v7 = vld [vmem:[#allocation8 + $0xa8] sm:$0xff]  }
 0x247   :  { %2838 = vmatpush1.bf16.msra.mxu0 %v4383_v9  ;;  %2920 = vmatpush1.bf16.msra.mxu1 %v4386_v10  ;;  %v4456_v9 = vld [vmem:[#allocation8 + $0xf0] sm:$0xff]  }
 0x248   :  { %2839 = vmatprep.subr.bf16.mxu0 %v4391_v11  ;;  %2921 = vmatprep.subr.bf16.mxu1 %v4394_v12  ;;  %v4457_v10 = vld [vmem:[#allocation8 + $0x30] sm:$0xff]   ;;  %v4459_v12 = vld [vmem:[#allocation8 + $0x78] sm:$0xff]  }
 0x249   :  { %v4458_v11 = vld [vmem:[#allocation8 + $0xb0] sm:$0xff]  }
 0x24b   :  { %2840 = vmatpush1.bf16.msra.mxu0 %v4389_v13  ;;  %2922 = vmatpush1.bf16.msra.mxu1 %v4392_v14  ;;  %v4460_v13 = vld [vmem:[#allocation8 + $0xf8] sm:$0xff]  }
 0x24c   :  { %2841 = vmatprep.subr.bf16.mxu0 %v4397_v15  ;;  %2923 = vmatprep.subr.bf16.mxu1 %v4400_v16  ;;  %v4461_v14 = vld [vmem:[#allocation8 + $0x38] sm:$0xff]   ;;  %v2118_v16 = vld [vmem:[%s4806_s4] sm:$0xf] }
 0x24d   :  { %v4462_v15 = vld [vmem:[#allocation8 + $0xb8] sm:$0xff]  }
 0x24f   :  { %2842 = vmatpush1.bf16.msra.mxu0 %v4395_v17  ;;  %2924 = vmatpush1.bf16.msra.mxu1 %v4398_v18  ;;  %v2123_v17 = vrot.slane %v2118_v16, %v360_v20  ;;  %v2131_v18 = vrot.slane %v2118_v16, %v368_v37 }
 0x250   :  { %2843 = vmatprep.subr.bf16.mxu0 %v4403_v24  ;;  %2925 = vmatprep.subr.bf16.mxu1 %v4406_v25  ;;  %v2127_v24 = vrot.slane %v2118_v16, %v364_v22 }
 0x253   :  { %2844 = vmatpush1.bf16.msra.mxu0 %v4401_v26  ;;  %2926 = vmatpush1.bf16.msra.mxu1 %v4404_v27 }
 0x254   :  { %2845 = vmatprep.subr.bf16.mxu0 %v4409_v29  ;;  %2927 = vmatprep.subr.bf16.mxu1 %v4412_v30 }
 0x257   :  { %2846 = vmatpush1.bf16.msra.mxu0 %v4407_v31  ;;  %2928 = vmatpush1.bf16.msra.mxu1 %v4410_v32 }
 0x258   :  { %2847 = vmatprep.subr.bf16.mxu0 %v4415_v33  ;;  %2929 = vmatprep.subr.bf16.mxu1 %v4418_v34 }
 0x25b   :  { %2848 = vmatpush1.bf16.msra.mxu0 %v4413_v35  ;;  %2930 = vmatpush1.bf16.msra.mxu1 %v4416_v36 }
 0x25c   :  { %2849 = vmatprep.subr.bf16.mxu0 %v4421_v39  ;;  %2931 = vmatprep.subr.bf16.mxu1 %v4424_v40 }
 0x25f   :  { %2850 = vmatpush1.bf16.msra.mxu0 %v4419_v42  ;;  %2932 = vmatpush1.bf16.msra.mxu1 %v4422_v43 }
 0x260   :  { %2851 = vmatprep.subr.bf16.mxu0 %v4427_v46  ;;  %2933 = vmatprep.subr.bf16.mxu1 %v4430_v47  ;;  %v3728_v46 = vld [vmem:[%s4808_s6] ss:$0 sm:$0xff]  ;;  %s4555_s6 = scalar_lea.vmem %s3320_s13, 512 }
 0x261   :  { %p4556_p4 = scmp.ne.s32.totalorder %s3320_s13, %s4555_s6  ;;  %p4561_p6 = scmp.lt.s32.totalorder %s4555_s6, %s4555_s6 }
 0x263   :  { %2852 = vmatpush1.bf16.msra.mxu0 %v4425_v48  ;;  %2934 = vmatpush1.bf16.msra.mxu1 %v4428_v49  ;;  %p4562_p7 = por %p4561_p6, %p4560_p5 }
 0x264   :  { %3761 = vmatprep.subr.bf16.mxu0 %v4431_v51  ;;  %3783 = vmatprep.subr.bf16.mxu1 %v4432_v52 }
 0x265   :  { %p4563_p8 = pnand %p4562_p7, %p4556_p4 }
 0x266   :  { %2854 = vmatmul.mubr.bf16.vlgmr.msra.gmra.mrb[4].mxu0 %v4756_v54  ;;  %2936 = vmatmul.mubr.bf16.vlgmr.msra.gmra.mrb[4].mxu1 %v4756_v54 }
 0x267   :  { %3762 = vmatpush3.bf16.msra.mxu0 %v4433_v53  ;;  %3239 = vmatprep.mubr.bf16.mxu0 %v4739_v38  ;;  %v4446_v38 = vld [vmem:[#allocation8 + $0x98] sm:$0xff]  }
 0x268   :  { %3784 = vmatpush3.bf16.msra.mxu1 %v4434_v21  ;;  %3279 = vmatprep.mubr.bf16.mxu1 %v4745_v44  ;;  %v4448_v44 = vld [vmem:[#allocation8 + $0xe0] sm:$0xff]  }
 0x269   :  { %3763 = vmatprep.subr.bf16.mxu0 %v4435_v55  ;;  %3785 = vmatprep.subr.bf16.mxu1 %v4436_v56 }
 0x26b   :  { %3764 = vmatpush3.bf16.msra.mxu0 %v4437_v28 }
 0x26c   :  { %3786 = vmatpush3.bf16.msra.mxu1 %v4438_v57  ;;  %3765 = vmatprep.subr.bf16.mxu0 %v4439_v58 }
 0x26d   :  { %3787 = vmatprep.subr.bf16.mxu1 %v4440_v59 }
 0x26f   :  { %3766 = vmatpush3.bf16.msra.mxu0 %v4441_v60 }
 0x270   :  { %3788 = vmatpush3.bf16.msra.mxu1 %v4442_v61  ;;  %3767 = vmatprep.subr.bf16.mxu0 %v4443_v62 }
 0x271   :  { %3789 = vmatprep.subr.bf16.mxu1 %v4444_v63 }
 0x273   :  { %3768 = vmatpush3.bf16.msra.mxu0 %v4445_v0 }
 0x274   :  { %3790 = vmatpush3.bf16.msra.mxu1 %v4446_v38  ;;  %3769 = vmatprep.subr.bf16.mxu0 %v4447_v1 }
 0x275   :  { %3791 = vmatprep.subr.bf16.mxu1 %v4448_v44 }
 0x277   :  { %3770 = vmatpush3.bf16.msra.mxu0 %v4449_v2 }
 0x278   :  { %3792 = vmatpush3.bf16.msra.mxu1 %v4450_v3  ;;  %3771 = vmatprep.subr.bf16.mxu0 %v4451_v4 }
 0x279   :  { %3793 = vmatprep.subr.bf16.mxu1 %v4452_v5 }
 0x27b   :  { %3772 = vmatpush3.bf16.msra.mxu0 %v4453_v6 }
 0x27c   :  { %3794 = vmatpush3.bf16.msra.mxu1 %v4454_v7  ;;  %3773 = vmatprep.subr.bf16.mxu0 %v4455_v8 }
 0x27d   :  { %3795 = vmatprep.subr.bf16.mxu1 %v4456_v9 }
 0x27f   :  { %3774 = vmatpush3.bf16.msra.mxu0 %v4457_v10 }
 0x280   :  { %3796 = vmatpush3.bf16.msra.mxu1 %v4458_v11  ;;  %3775 = vmatprep.subr.bf16.mxu0 %v4459_v12 }
 0x281   :  { %3797 = vmatprep.subr.bf16.mxu1 %v4460_v13 }
 0x283   :  { %3776 = vmatpush3.bf16.msra.mxu0 %v4461_v14 }
 0x284   :  { %3798 = vmatpush3.bf16.msra.mxu1 %v4462_v15 }
 0x286   :  { %3240 = vmatmul.mubr.bf16.vlgmr.msra.gmra.mrb[8].mxu0 %v4741_v41  ;;  %v2135_v41 = vrot.slane %v2118_v16, %v372_v23 }
 0x287   :  { %3280 = vmatmul.mubr.bf16.vlgmr.msra.gmra.mrb[8].mxu1 %v4756_v54 }
 0x339   :  { %v2855_v25 = vpop.f32.mrb[4].mxu0  ;;  %v2937_v26 = vpop.f32.mrb[4].mxu1 }
 0x33a   :  { %v3809_v27 = vadd.f32 %v2855_v25, %v2123_v17  ;;  %v2857_v29 = vpop.f32.mrb[5].mxu0  ;;  %v2939_v30 = vpop.f32.mrb[5].mxu1  ;;  %v3811_v31 = vadd.f32 %v2937_v26, %v2131_v18 }
 0x33b   :  { %v3810_v32 = vadd.f32 %v2857_v29, %v2127_v24  ;;  %v2859_v33 = vpop.f32.mrb[6].mxu0  ;;  %v2941_v34 = vpop.f32.mrb[6].mxu1  ;;  %v3812_v37 = vadd.f32 %v2939_v30, %v2135_v41 }
 0x33c   :  { %v3287_v35 = vmul.f32 %v3809_v27, %v3809_v27  ;;  %v2860_v20 = vpop.f32.mrb[7].mxu0  ;;  %v2942_v36 = vpop.f32.mrb[7].mxu1  ;;  %v3289_v40 = vmul.f32 %v3811_v31, %v3811_v31 }
 0x33d   :  { %v3288_v39 = vmul.f32 %v3810_v32, %v3810_v32  ;;  %v3290_v22 = vmul.f32 %v3812_v37, %v3812_v37 }
 0x33f   :  { %v3291_v42 = vadd.f32 %v3288_v39, %v3287_v35 }
 0x341   :  { %v3292_v43 = vadd.f32 %v3291_v42, %v3289_v40 }
 0x343   :  { %v3293_v45 = vadd.f32 %v3292_v43, %v3290_v22 }
 0x345   :  { %3294 = vadd.xlane.f32.xlu0 %v3293_v45 }
 0x359   :  { %v3777_v19 = vpop.f32.mrb[8].mxu0 }
 0x35a   :  { %v3799_v23 = vpop.f32.mrb[8].mxu1  ;;  %v3778_v47 = vpop.f32.mrb[9].mxu0 }
 0x35b   :  { %v3779_v48 = vadd.f32 %v3778_v47, %v3777_v19  ;;  %v3800_v49 = vpop.f32.mrb[9].mxu1  ;;  %v3780_v50 = vpop.f32.mrb[10].mxu0 }
 0x35c   :  { %v3801_v51 = vadd.f32 %v3800_v49, %v3799_v23  ;;  %v3802_v52 = vpop.f32.mrb[10].mxu1  ;;  %v3781_v53 = vpop.f32.mrb[11].mxu0 }
 0x35d   :  { %v3242_v54 = vadd.f32 %v3779_v48, %v3728_v46  ;;  %v3803_v21 = vpop.f32.mrb[11].mxu1 }
 0x35f   :  { %v3282_v55 = vadd.f32 %v3801_v51, %v3242_v54 }
 0x361   :  { %v3302_v56 = vmul.f32 %v3282_v55, %v3282_v55 }
 0x363   :  { %3303 = vadd.xlane.f32.xlu0 %v3302_v56 }
 0x3d2   :  { %v3295_v28 = vpop.xlane.xlu0 %3294 }
 0x3d3   :  { %v3296_v57 = vmax.f32 %v3295_v28, 1e-24 }
 0x3d5   :  { %4463 = vrsqrt.f32 %v3296_v57 }
 0x3df   :  { %v4464_v58 = vpop.eup %4463 }
 0x3e0   :  { %v3298_v59 = vmul.f32 %v4464_v58, %v3809_v27  ;;  %v3299_v60 = vmul.f32 %v4464_v58, %v3810_v32  ;;  %v3300_v61 = vmul.f32 %v4464_v58, %v3811_v31  ;;  %v3301_v62 = vmul.f32 %v4464_v58, %v3812_v37 }
 0x3e2   :  { %3308 = vst [vmem:[#allocation10] sm:$0xff] %v3298_v59  ;;  %3309 = vst [vmem:[#allocation10 + $0x8] sm:$0xff] %v3299_v60 }
 0x3e3   :  { %3310 = vst [vmem:[#allocation10 + $0x10] sm:$0xff] %v3300_v61  ;;  %3311 = vst [vmem:[#allocation10 + $0x18] sm:$0xff] %v3301_v62 }
 0x3e4   :  { %4566 = shalt.err (!%p4563_p8)
}
 0x3e5   :  { %s4567_s18 = scalar_lea.hbm %s4809_s7, 512 }
 0x3e6   :  { %p4568_p9 = scmp.ne.s32.totalorder %s4809_s7, %s4567_s18  ;;  %p4571_p10 = scmp.lt.u32.totalorder %s4567_s18, %s4809_s7 }
 0x3e8   :  { %p4573_p11 = pnand %p4571_p10, %p4568_p9 }
 0x3ea   :  { %4576 = shalt.err (!%p4573_p11)
}
 0x3eb   :  { %3322 = dma.vmem_to_hbm [thread:$0]  %s3320_s13, 512, %s4809_s7, [#allocation4]  }
 0x3ec   :  { %s4618_s25 = smov [#allocation11]  }
 0x3ed   :  { %s3329_s26 = sshll.u32 %s4618_s25, 4  ;;  %s3330_s26 = int_to_ptr.vmem [resolvable:$true] %s3329_s26 }
 0x3ee   :  { %s4577_s27 = scalar_lea.vmem %s3330_s26, 128  ;;  %p4582_p13 = scmp.lt.s32.totalorder %s3330_s26, %s3330_s26 }
 0x3ef   :  { %p4578_p12 = scmp.ne.s32.totalorder %s3330_s26, %s4577_s27  ;;  %p4583_p0 = scmp.lt.s32.totalorder %s4577_s27, %s4577_s27 }
 0x3f0   :  { %v3304_v63 = vpop.xlane.xlu0 %3303 }
 0x3f1   :  { %v3305_v0 = vmax.f32 %v3304_v63, 1e-24  ;;  %p4584_p1 = por %p4583_p0, %p4582_p13 }
 0x3f3   :  { %4465 = vrsqrt.f32 %v3305_v0  ;;  %p4585_p2 = pnand %p4584_p1, %p4578_p12 }
 0x3fd   :  { %v4466_v38 = vpop.eup %4465 }
 0x3fe   :  { %v3307_v1 = vmul.f32 %v4466_v38, %v3282_v55 }
 0x400   :  { %3312 = vst [vmem:[#allocation11] sm:$0xff] %v3307_v1 }
 0x401   :  { %4588 = shalt.err (!%p4585_p2)
}
 0x402   :  { %s4589_s7 = scalar_lea.hbm %s4810_s8, 128 }
 0x403   :  { %p4590_p3 = scmp.ne.s32.totalorder %s4810_s8, %s4589_s7  ;;  %p4593_p4 = scmp.lt.u32.totalorder %s4589_s7, %s4810_s8 }
 0x405   :  { %p4595_p5 = pnand %p4593_p4, %p4590_p3 }
 0x407   :  { %4598 = shalt.err (!%p4595_p5)
}
 0x408   :  { %3332 = dma.vmem_to_hbm [thread:$0]  %s3330_s26, 128, %s4810_s8, [#allocation12]  }
 0x409   :  { %4605 = dma.done.wait [#allocation4], 512  }
 0x40a   :  { %4606 = vsyncadd [#allocation4], 4294966784 }
 0x40b   :  { %4607 = dma.done.wait [#allocation12], 128  }
 0x40c   :  { %4608 = vsyncadd [#allocation12], 4294967168 }
 0x40d   :  { %3339 = vsyncpa [#allocation3], 1 }
 0x40e   :  { %3340 = vsyncpa [#allocation6], 1 }
 0x40f   :  { %3341 = vsyncpa [#allocation9], 1 }
 0x410   :  { %3342 = vsyncpa [#allocation4], 1 }
 0x411   :  { %3343 = vsyncpa [#allocation12], 1 }

</bundles_post_ra>
